<compile_context>
chip_gen: v6e
topology: v6e:2x2x1
jax: 0.10.0
libtpu: 0.0.40
codegen_flags: <defaults>
</compile_context>

<pallas_src>
import functools

import jax
import jax.numpy as jnp
from jax.experimental import pallas as pl
from jax.experimental.pallas import tpu as pltpu

LANE = 128
# PyTorch gate order is [i, f, g, o]; kernel lane layout is [i, f, o, g] so one
# sigmoid covers i|f|o contiguously and one tanh covers g.
_GATE_SRC_ORDER = (0, 1, 3, 2)  # kernel gate position p  <-  PyTorch gate index


def _round_up(x, m):
    return (x + m - 1) // m * m


def _choose_b_tile(B):
    """Multiple-of-8 batch tile, <=128, keeping >=2 grid steps when B allows."""
    if B <= 8:
        return 8
    bt = min(128, _round_up(B, 8))
    while bt > 8 and _round_up(B, bt) // bt < 2:
        bt = _round_up(bt // 2, 8)
    return bt


def lstm_last_hidden_kernel(x_ref, wih_ref, whh_ref, b_ref, out_ref):
    # x_ref:   (B_TILE, seq_len) f32  inputs (input_size == 1, squeezed)
    # wih_ref: (1, 4*Hp)         f32  W_ih^T, gates [i,f,o,g], each padded to Hp
    # whh_ref: (Hp, 4*Hp)        f32  W_hh^T, same layout (zero padding)
    # b_ref:   (1, 4*Hp)         f32  b_ih + b_hh, same layout (zero padding)
    # out_ref: (B_TILE, Hp)      f32  final hidden state (first H lanes real)
    bt, seq_len = x_ref.shape
    hp = out_ref.shape[1]

    x = x_ref[...]                                   # (B_TILE, seq_len)
    wih = wih_ref[...]                               # (1, 4*Hp)
    bias = b_ref[...]                                # (1, 4*Hp)

    h = jnp.zeros((bt, hp), jnp.float32)             # vreg-carried state
    c = jnp.zeros((bt, hp), jnp.float32)

    # seq_len is a static trace-time constant: fully unroll the recurrence.
    for t in range(seq_len):
        # Input projection: input_size == 1 -> broadcast outer product (VPU).
        gx = x[:, t:t + 1] * wih + bias              # (B_TILE, 4*Hp)
        # Recurrence matmul on the MXU; whh streamed from VMEM per use
        # (no full-matrix vreg hoist).  Padded rows/cols contribute 0.
        g = gx + jnp.dot(h, whh_ref[...], preferred_element_type=jnp.float32)
        ifo = jax.nn.sigmoid(g[:, 0:3 * hp])         # one EUP pass over i|f|o
        gg = jnp.tanh(g[:, 3 * hp:4 * hp])           # one EUP pass over g
        i_gate = ifo[:, 0:hp]
        f_gate = ifo[:, hp:2 * hp]
        o_gate = ifo[:, 2 * hp:3 * hp]
        c = f_gate * c + i_gate * gg                 # padded lanes stay exactly 0
        h = o_gate * jnp.tanh(c)

    out_ref[...] = h


def prepare_encoder_params(w_ih, w_hh, b_ih, b_hh):
    """One-time re-layout of PyTorch LSTM1 params for the Pallas kernel.

    w_ih: (4H, input_size), w_hh: (4H, H), b_ih/b_hh: (4H,)   (PyTorch layout)
    Returns (wih_p, whh_p, bias_p, H, Hp) with gates reordered to [i,f,o,g],
    each gate padded to Hp = round_up(H, 128) lanes, and weights pre-transposed.
    """
    four_h, in_size = w_ih.shape
    H = four_h // 4
    Hp = _round_up(H, LANE)
    wih_p = jnp.zeros((in_size, 4 * Hp), jnp.float32)
    whh_p = jnp.zeros((Hp, 4 * Hp), jnp.float32)
    bias_p = jnp.zeros((1, 4 * Hp), jnp.float32)
    b = (b_ih + b_hh).astype(jnp.float32)
    for p, s in enumerate(_GATE_SRC_ORDER):
        wih_p = wih_p.at[:, p * Hp:p * Hp + H].set(
            w_ih[s * H:(s + 1) * H, :].T.astype(jnp.float32))
        whh_p = whh_p.at[:H, p * Hp:p * Hp + H].set(
            w_hh[s * H:(s + 1) * H, :].T.astype(jnp.float32))
        bias_p = bias_p.at[:, p * Hp:p * Hp + H].set(b[s * H:(s + 1) * H][None, :])
    return wih_p, whh_p, bias_p, H, Hp


@functools.partial(jax.jit, static_argnames=("hidden_size", "hp", "b_tile"))
def _encoder_forward_impl(x2d, wih_p, whh_p, bias_p, *, hidden_size, hp, b_tile):
    """x2d: (B, seq_len) f32 (input_size squeezed) -> (B, hidden_size)."""
    B, seq_len = x2d.shape
    b_pad = _round_up(B, b_tile)
    if b_pad != B:
        x2d = jnp.pad(x2d, ((0, b_pad - B), (0, 0)))   # zero rows: harmless
    out = pl.pallas_call(
        lstm_last_hidden_kernel,
        out_shape=jax.ShapeDtypeStruct((b_pad, hp), jnp.float32),
        grid=(b_pad // b_tile,),
        in_specs=[
            pl.BlockSpec((b_tile, seq_len), lambda b: (b, 0)),
            # Grid-invariant weight blocks: constant index map -> fetched once,
            # resident in VMEM for all grid steps.
            pl.BlockSpec((1, 4 * hp), lambda b: (0, 0)),
            pl.BlockSpec((hp, 4 * hp), lambda b: (0, 0)),
            pl.BlockSpec((1, 4 * hp), lambda b: (0, 0)),
        ],
        out_specs=pl.BlockSpec((b_tile, hp), lambda b: (b, 0)),
        compiler_params=pltpu.CompilerParams(dimension_semantics=("parallel",)),
    )(x2d.astype(jnp.float32), wih_p, whh_p, bias_p)
    return out[:B, :hidden_size]


def encoder_forward_batched(x, params):
    """x: (B, seq_len, 1) -> (B, hidden_size): last LSTM1 hidden state per seq."""
    wih_p, whh_p, bias_p, H, Hp = params
    B, seq_len, in_size = x.shape
    assert in_size == 1, "Encoder.forward's reshape implies input_size == 1"
    b_tile = _choose_b_tile(B)
    return _encoder_forward_impl(x[:, :, 0], wih_p, whh_p, bias_p,
                                 hidden_size=H, hp=Hp, b_tile=b_tile)


def encoder_forward(x, params):
    """Pallas equivalent of Encoder.forward: hidden_n reshaped to (input_size, H).

    Note: this single-sequence path is dispatch/latency-bound by construction
    (~0.5 MFLOP, 8-step serial chain); the batched entry point above is where
    the hardware actually gets used.
    """
    wih_p, whh_p, bias_p, H, Hp = params
    seq_len, input_size = x.shape
    assert input_size == 1, "Encoder.forward's reshape implies input_size == 1"
    h = encoder_forward_batched(x.reshape(1, seq_len, input_size), params)
    return h.reshape(input_size, H)


def reference_forward_batched(x, w_ih, w_hh, b_ih, b_hh):
    """Pure-JAX reference of the PyTorch LSTM recurrence (last hidden state)."""
    B, seq_len, _ = x.shape
    H = w_hh.shape[1]
    h = jnp.zeros((B, H), jnp.float32)
    c = jnp.zeros((B, H), jnp.float32)
    for t in range(seq_len):
        g = x[:, t, :] @ w_ih.T + b_ih + h @ w_hh.T + b_hh
        i_gate = jax.nn.sigmoid(g[:, 0:H])
        f_gate = jax.nn.sigmoid(g[:, H:2 * H])
        g_gate = jnp.tanh(g[:, 2 * H:3 * H])
        o_gate = jax.nn.sigmoid(g[:, 3 * H:4 * H])
        c = f_gate * c + i_gate * g_gate
        h = o_gate * jnp.tanh(c)
    return h


def reference_forward(x, w_ih, w_hh, b_ih, b_hh):
    seq_len, input_size = x.shape
    H = w_hh.shape[1]
    h = reference_forward_batched(x[None], w_ih, w_hh, b_ih, b_hh)
    return h.reshape(input_size, H)


if __name__ == "__main__":
    # Module config: seq_len=8, input_size=1 (required by the reshape),
    # embedding_size=32 -> hidden_size=64.
    seq_len = 8
    input_size = 1
    embedding_size = 32
    hidden_size = 2 * embedding_size  # 64

    key = jax.random.PRNGKey(0)
    kx, kb, k1, k2, k3, k4 = jax.random.split(key, 6)

    bound = 1.0 / jnp.sqrt(jnp.float32(hidden_size))
    w_ih = jax.random.uniform(k1, (4 * hidden_size, input_size), jnp.float32, -bound, bound)
    w_hh = jax.random.uniform(k2, (4 * hidden_size, hidden_size), jnp.float32, -bound, bound)
    b_ih = jax.random.uniform(k3, (4 * hidden_size,), jnp.float32, -bound, bound)
    b_hh = jax.random.uniform(k4, (4 * hidden_size,), jnp.float32, -bound, bound)

    params = prepare_encoder_params(w_ih, w_hh, b_ih, b_hh)  # one-time re-layout

    # Module-semantics path (single sequence, batch==1 implicit in forward()).
    x = jax.random.normal(kx, (seq_len, input_size), jnp.float32)
    hidden_n = jax.block_until_ready(encoder_forward(x, params))
    ref = reference_forward(x, w_ih, w_hh, b_ih, b_hh)
    assert hidden_n.shape == (input_size, hidden_size)
    assert jnp.allclose(hidden_n, ref, rtol=1e-5, atol=1e-5)

    # Batched path: B not a multiple of the tile (exercises zero-padding and the
    # >=2-grid-step "parallel" split; B=20 -> B_TILE=16, 2 grid steps).
    B = 20
    xb = jax.random.normal(kb, (B, seq_len, input_size), jnp.float32)
    hb = jax.block_until_ready(encoder_forward_batched(xb, params))
    refb = reference_forward_batched(xb, w_ih, w_hh, b_ih, b_hh)
    assert hb.shape == (B, hidden_size)
    assert jnp.allclose(hb, refb, rtol=1e-5, atol=1e-5)

    print("KERNEL_OK")
</pallas_src>

<mosaic_0001>
module attributes {stable_mosaic.version = 11 : i64} {
  func.func @lstm_last_hidden_kernel(%arg0: i32, %arg1: memref<8x8xf32, #tpu.memory_space<vmem>>, %arg2: memref<1x512xf32, #tpu.memory_space<vmem>>, %arg3: memref<128x512xf32, #tpu.memory_space<vmem>>, %arg4: memref<1x512xf32, #tpu.memory_space<vmem>>, %arg5: memref<8x128xf32, #tpu.memory_space<vmem>>) attributes {dimension_semantics = [#tpu.dimension_semantics<parallel>], iteration_bounds = array<i64: 1>, scalar_prefetch = 0 : i64, scratch_operands = 0 : i64, tpu.core_type = #tpu.core_type<tc>, window_params = [{transform_indices = @transform_0, window_bounds = array<i64: 8, 8>}, {pipeline_mode = #tpu.pipeline_mode<synchronous>, transform_indices = @transform_1, window_bounds = array<i64: 1, 512>}, {pipeline_mode = #tpu.pipeline_mode<synchronous>, transform_indices = @transform_2, window_bounds = array<i64: 128, 512>}, {pipeline_mode = #tpu.pipeline_mode<synchronous>, transform_indices = @transform_3, window_bounds = array<i64: 1, 512>}, {transform_indices = @transform_4, window_bounds = array<i64: 8, 128>}]} {
    %c0 = arith.constant 0 : index
    %c0_0 = arith.constant 0 : index
    %0 = vector.load %arg1[%c0, %c0_0] : memref<8x8xf32, #tpu.memory_space<vmem>>, vector<8x8xf32>
    %c0_1 = arith.constant 0 : index
    %c0_2 = arith.constant 0 : index
    %1 = vector.load %arg2[%c0_1, %c0_2] : memref<1x512xf32, #tpu.memory_space<vmem>>, vector<1x512xf32>
    %c0_3 = arith.constant 0 : index
    %c0_4 = arith.constant 0 : index
    %2 = vector.load %arg4[%c0_3, %c0_4] : memref<1x512xf32, #tpu.memory_space<vmem>>, vector<1x512xf32>
    %cst = arith.constant 0.000000e+00 : f32
    %3 = vector.broadcast %cst : f32 to vector<8x128xf32>
    %cst_5 = arith.constant 0.000000e+00 : f32
    %4 = vector.broadcast %cst_5 : f32 to vector<8x128xf32>
    %5 = vector.extract_strided_slice %0 {offsets = [0, 0], sizes = [8, 1], strides = [1, 1]} : vector<8x8xf32> to vector<8x1xf32>
    %6 = vector.broadcast %5 : vector<8x1xf32> to vector<8x512xf32>
    %7 = vector.broadcast %1 : vector<1x512xf32> to vector<8x512xf32>
    %8 = arith.mulf %6, %7 : vector<8x512xf32>
    %9 = vector.broadcast %2 : vector<1x512xf32> to vector<8x512xf32>
    %10 = arith.addf %8, %9 : vector<8x512xf32>
    %c0_6 = arith.constant 0 : index
    %c0_7 = arith.constant 0 : index
    %11 = vector.load %arg3[%c0_6, %c0_7] : memref<128x512xf32, #tpu.memory_space<vmem>>, vector<128x512xf32>
    %cst_8 = arith.constant dense<0.000000e+00> : vector<8x512xf32>
    %12 = tpu.matmul %3, %11, %cst_8 {dimension_numbers = #tpu.dot_dimension_numbers<[1], [0], [0], [1], [0, 0, 1, 1], [], []>} : vector<8x128xf32>, vector<128x512xf32>, vector<8x512xf32> -> vector<8x512xf32>
    %13 = arith.addf %10, %12 : vector<8x512xf32>
    %14 = vector.extract_strided_slice %13 {offsets = [0, 0], sizes = [8, 384], strides = [1, 1]} : vector<8x512xf32> to vector<8x384xf32>
    %15 = arith.negf %14 : vector<8x384xf32>
    %16 = math.exp %15 : vector<8x384xf32>
    %cst_9 = arith.constant 1.000000e+00 : f32
    %17 = vector.broadcast %cst_9 : f32 to vector<8x384xf32>
    %18 = arith.addf %17, %16 : vector<8x384xf32>
    %19 = arith.divf %17, %18 : vector<8x384xf32>
    %20 = vector.extract_strided_slice %13 {offsets = [0, 384], sizes = [8, 128], strides = [1, 1]} : vector<8x512xf32> to vector<8x128xf32>
    %21 = math.tanh %20 : vector<8x128xf32>
    %22 = vector.extract_strided_slice %19 {offsets = [0, 0], sizes = [8, 128], strides = [1, 1]} : vector<8x384xf32> to vector<8x128xf32>
    %23 = vector.extract_strided_slice %19 {offsets = [0, 128], sizes = [8, 128], strides = [1, 1]} : vector<8x384xf32> to vector<8x128xf32>
    %24 = vector.extract_strided_slice %19 {offsets = [0, 256], sizes = [8, 128], strides = [1, 1]} : vector<8x384xf32> to vector<8x128xf32>
    %25 = arith.mulf %23, %4 : vector<8x128xf32>
    %26 = arith.mulf %22, %21 : vector<8x128xf32>
    %27 = arith.addf %25, %26 : vector<8x128xf32>
    %28 = math.tanh %27 : vector<8x128xf32>
    %29 = arith.mulf %24, %28 : vector<8x128xf32>
    %30 = vector.extract_strided_slice %0 {offsets = [0, 1], sizes = [8, 1], strides = [1, 1]} : vector<8x8xf32> to vector<8x1xf32>
    %31 = vector.broadcast %30 : vector<8x1xf32> to vector<8x512xf32>
    %32 = vector.broadcast %1 : vector<1x512xf32> to vector<8x512xf32>
    %33 = arith.mulf %31, %32 : vector<8x512xf32>
    %34 = vector.broadcast %2 : vector<1x512xf32> to vector<8x512xf32>
    %35 = arith.addf %33, %34 : vector<8x512xf32>
    %c0_10 = arith.constant 0 : index
    %c0_11 = arith.constant 0 : index
    %36 = vector.load %arg3[%c0_10, %c0_11] : memref<128x512xf32, #tpu.memory_space<vmem>>, vector<128x512xf32>
    %cst_12 = arith.constant dense<0.000000e+00> : vector<8x512xf32>
    %37 = tpu.matmul %29, %36, %cst_12 {dimension_numbers = #tpu.dot_dimension_numbers<[1], [0], [0], [1], [0, 0, 1, 1], [], []>} : vector<8x128xf32>, vector<128x512xf32>, vector<8x512xf32> -> vector<8x512xf32>
    %38 = arith.addf %35, %37 : vector<8x512xf32>
    %39 = vector.extract_strided_slice %38 {offsets = [0, 0], sizes = [8, 384], strides = [1, 1]} : vector<8x512xf32> to vector<8x384xf32>
    %40 = arith.negf %39 : vector<8x384xf32>
    %41 = math.exp %40 : vector<8x384xf32>
    %cst_13 = arith.constant 1.000000e+00 : f32
    %42 = vector.broadcast %cst_13 : f32 to vector<8x384xf32>
    %43 = arith.addf %42, %41 : vector<8x384xf32>
    %44 = arith.divf %42, %43 : vector<8x384xf32>
    %45 = vector.extract_strided_slice %38 {offsets = [0, 384], sizes = [8, 128], strides = [1, 1]} : vector<8x512xf32> to vector<8x128xf32>
    %46 = math.tanh %45 : vector<8x128xf32>
    %47 = vector.extract_strided_slice %44 {offsets = [0, 0], sizes = [8, 128], strides = [1, 1]} : vector<8x384xf32> to vector<8x128xf32>
    %48 = vector.extract_strided_slice %44 {offsets = [0, 128], sizes = [8, 128], strides = [1, 1]} : vector<8x384xf32> to vector<8x128xf32>
    %49 = vector.extract_strided_slice %44 {offsets = [0, 256], sizes = [8, 128], strides = [1, 1]} : vector<8x384xf32> to vector<8x128xf32>
    %50 = arith.mulf %48, %27 : vector<8x128xf32>
    %51 = arith.mulf %47, %46 : vector<8x128xf32>
    %52 = arith.addf %50, %51 : vector<8x128xf32>
    %53 = math.tanh %52 : vector<8x128xf32>
    %54 = arith.mulf %49, %53 : vector<8x128xf32>
    %55 = vector.extract_strided_slice %0 {offsets = [0, 2], sizes = [8, 1], strides = [1, 1]} : vector<8x8xf32> to vector<8x1xf32>
    %56 = vector.broadcast %55 : vector<8x1xf32> to vector<8x512xf32>
    %57 = vector.broadcast %1 : vector<1x512xf32> to vector<8x512xf32>
    %58 = arith.mulf %56, %57 : vector<8x512xf32>
    %59 = vector.broadcast %2 : vector<1x512xf32> to vector<8x512xf32>
    %60 = arith.addf %58, %59 : vector<8x512xf32>
    %c0_14 = arith.constant 0 : index
    %c0_15 = arith.constant 0 : index
    %61 = vector.load %arg3[%c0_14, %c0_15] : memref<128x512xf32, #tpu.memory_space<vmem>>, vector<128x512xf32>
    %cst_16 = arith.constant dense<0.000000e+00> : vector<8x512xf32>
    %62 = tpu.matmul %54, %61, %cst_16 {dimension_numbers = #tpu.dot_dimension_numbers<[1], [0], [0], [1], [0, 0, 1, 1], [], []>} : vector<8x128xf32>, vector<128x512xf32>, vector<8x512xf32> -> vector<8x512xf32>
    %63 = arith.addf %60, %62 : vector<8x512xf32>
    %64 = vector.extract_strided_slice %63 {offsets = [0, 0], sizes = [8, 384], strides = [1, 1]} : vector<8x512xf32> to vector<8x384xf32>
    %65 = arith.negf %64 : vector<8x384xf32>
    %66 = math.exp %65 : vector<8x384xf32>
    %cst_17 = arith.constant 1.000000e+00 : f32
    %67 = vector.broadcast %cst_17 : f32 to vector<8x384xf32>
    %68 = arith.addf %67, %66 : vector<8x384xf32>
    %69 = arith.divf %67, %68 : vector<8x384xf32>
    %70 = vector.extract_strided_slice %63 {offsets = [0, 384], sizes = [8, 128], strides = [1, 1]} : vector<8x512xf32> to vector<8x128xf32>
    %71 = math.tanh %70 : vector<8x128xf32>
    %72 = vector.extract_strided_slice %69 {offsets = [0, 0], sizes = [8, 128], strides = [1, 1]} : vector<8x384xf32> to vector<8x128xf32>
    %73 = vector.extract_strided_slice %69 {offsets = [0, 128], sizes = [8, 128], strides = [1, 1]} : vector<8x384xf32> to vector<8x128xf32>
    %74 = vector.extract_strided_slice %69 {offsets = [0, 256], sizes = [8, 128], strides = [1, 1]} : vector<8x384xf32> to vector<8x128xf32>
    %75 = arith.mulf %73, %52 : vector<8x128xf32>
    %76 = arith.mulf %72, %71 : vector<8x128xf32>
    %77 = arith.addf %75, %76 : vector<8x128xf32>
    %78 = math.tanh %77 : vector<8x128xf32>
    %79 = arith.mulf %74, %78 : vector<8x128xf32>
    %80 = vector.extract_strided_slice %0 {offsets = [0, 3], sizes = [8, 1], strides = [1, 1]} : vector<8x8xf32> to vector<8x1xf32>
    %81 = vector.broadcast %80 : vector<8x1xf32> to vector<8x512xf32>
    %82 = vector.broadcast %1 : vector<1x512xf32> to vector<8x512xf32>
    %83 = arith.mulf %81, %82 : vector<8x512xf32>
    %84 = vector.broadcast %2 : vector<1x512xf32> to vector<8x512xf32>
    %85 = arith.addf %83, %84 : vector<8x512xf32>
    %c0_18 = arith.constant 0 : index
    %c0_19 = arith.constant 0 : index
    %86 = vector.load %arg3[%c0_18, %c0_19] : memref<128x512xf32, #tpu.memory_space<vmem>>, vector<128x512xf32>
    %cst_20 = arith.constant dense<0.000000e+00> : vector<8x512xf32>
    %87 = tpu.matmul %79, %86, %cst_20 {dimension_numbers = #tpu.dot_dimension_numbers<[1], [0], [0], [1], [0, 0, 1, 1], [], []>} : vector<8x128xf32>, vector<128x512xf32>, vector<8x512xf32> -> vector<8x512xf32>
    %88 = arith.addf %85, %87 : vector<8x512xf32>
    %89 = vector.extract_strided_slice %88 {offsets = [0, 0], sizes = [8, 384], strides = [1, 1]} : vector<8x512xf32> to vector<8x384xf32>
    %90 = arith.negf %89 : vector<8x384xf32>
    %91 = math.exp %90 : vector<8x384xf32>
    %cst_21 = arith.constant 1.000000e+00 : f32
    %92 = vector.broadcast %cst_21 : f32 to vector<8x384xf32>
    %93 = arith.addf %92, %91 : vector<8x384xf32>
    %94 = arith.divf %92, %93 : vector<8x384xf32>
    %95 = vector.extract_strided_slice %88 {offsets = [0, 384], sizes = [8, 128], strides = [1, 1]} : vector<8x512xf32> to vector<8x128xf32>
    %96 = math.tanh %95 : vector<8x128xf32>
    %97 = vector.extract_strided_slice %94 {offsets = [0, 0], sizes = [8, 128], strides = [1, 1]} : vector<8x384xf32> to vector<8x128xf32>
    %98 = vector.extract_strided_slice %94 {offsets = [0, 128], sizes = [8, 128], strides = [1, 1]} : vector<8x384xf32> to vector<8x128xf32>
    %99 = vector.extract_strided_slice %94 {offsets = [0, 256], sizes = [8, 128], strides = [1, 1]} : vector<8x384xf32> to vector<8x128xf32>
    %100 = arith.mulf %98, %77 : vector<8x128xf32>
    %101 = arith.mulf %97, %96 : vector<8x128xf32>
    %102 = arith.addf %100, %101 : vector<8x128xf32>
    %103 = math.tanh %102 : vector<8x128xf32>
    %104 = arith.mulf %99, %103 : vector<8x128xf32>
    %105 = vector.extract_strided_slice %0 {offsets = [0, 4], sizes = [8, 1], strides = [1, 1]} : vector<8x8xf32> to vector<8x1xf32>
    %106 = vector.broadcast %105 : vector<8x1xf32> to vector<8x512xf32>
    %107 = vector.broadcast %1 : vector<1x512xf32> to vector<8x512xf32>
    %108 = arith.mulf %106, %107 : vector<8x512xf32>
    %109 = vector.broadcast %2 : vector<1x512xf32> to vector<8x512xf32>
    %110 = arith.addf %108, %109 : vector<8x512xf32>
    %c0_22 = arith.constant 0 : index
    %c0_23 = arith.constant 0 : index
    %111 = vector.load %arg3[%c0_22, %c0_23] : memref<128x512xf32, #tpu.memory_space<vmem>>, vector<128x512xf32>
    %cst_24 = arith.constant dense<0.000000e+00> : vector<8x512xf32>
    %112 = tpu.matmul %104, %111, %cst_24 {dimension_numbers = #tpu.dot_dimension_numbers<[1], [0], [0], [1], [0, 0, 1, 1], [], []>} : vector<8x128xf32>, vector<128x512xf32>, vector<8x512xf32> -> vector<8x512xf32>
    %113 = arith.addf %110, %112 : vector<8x512xf32>
    %114 = vector.extract_strided_slice %113 {offsets = [0, 0], sizes = [8, 384], strides = [1, 1]} : vector<8x512xf32> to vector<8x384xf32>
    %115 = arith.negf %114 : vector<8x384xf32>
    %116 = math.exp %115 : vector<8x384xf32>
    %cst_25 = arith.constant 1.000000e+00 : f32
    %117 = vector.broadcast %cst_25 : f32 to vector<8x384xf32>
    %118 = arith.addf %117, %116 : vector<8x384xf32>
    %119 = arith.divf %117, %118 : vector<8x384xf32>
    %120 = vector.extract_strided_slice %113 {offsets = [0, 384], sizes = [8, 128], strides = [1, 1]} : vector<8x512xf32> to vector<8x128xf32>
    %121 = math.tanh %120 : vector<8x128xf32>
    %122 = vector.extract_strided_slice %119 {offsets = [0, 0], sizes = [8, 128], strides = [1, 1]} : vector<8x384xf32> to vector<8x128xf32>
    %123 = vector.extract_strided_slice %119 {offsets = [0, 128], sizes = [8, 128], strides = [1, 1]} : vector<8x384xf32> to vector<8x128xf32>
    %124 = vector.extract_strided_slice %119 {offsets = [0, 256], sizes = [8, 128], strides = [1, 1]} : vector<8x384xf32> to vector<8x128xf32>
    %125 = arith.mulf %123, %102 : vector<8x128xf32>
    %126 = arith.mulf %122, %121 : vector<8x128xf32>
    %127 = arith.addf %125, %126 : vector<8x128xf32>
    %128 = math.tanh %127 : vector<8x128xf32>
    %129 = arith.mulf %124, %128 : vector<8x128xf32>
    %130 = vector.extract_strided_slice %0 {offsets = [0, 5], sizes = [8, 1], strides = [1, 1]} : vector<8x8xf32> to vector<8x1xf32>
    %131 = vector.broadcast %130 : vector<8x1xf32> to vector<8x512xf32>
    %132 = vector.broadcast %1 : vector<1x512xf32> to vector<8x512xf32>
    %133 = arith.mulf %131, %132 : vector<8x512xf32>
    %134 = vector.broadcast %2 : vector<1x512xf32> to vector<8x512xf32>
    %135 = arith.addf %133, %134 : vector<8x512xf32>
    %c0_26 = arith.constant 0 : index
    %c0_27 = arith.constant 0 : index
    %136 = vector.load %arg3[%c0_26, %c0_27] : memref<128x512xf32, #tpu.memory_space<vmem>>, vector<128x512xf32>
    %cst_28 = arith.constant dense<0.000000e+00> : vector<8x512xf32>
    %137 = tpu.matmul %129, %136, %cst_28 {dimension_numbers = #tpu.dot_dimension_numbers<[1], [0], [0], [1], [0, 0, 1, 1], [], []>} : vector<8x128xf32>, vector<128x512xf32>, vector<8x512xf32> -> vector<8x512xf32>
    %138 = arith.addf %135, %137 : vector<8x512xf32>
    %139 = vector.extract_strided_slice %138 {offsets = [0, 0], sizes = [8, 384], strides = [1, 1]} : vector<8x512xf32> to vector<8x384xf32>
    %140 = arith.negf %139 : vector<8x384xf32>
    %141 = math.exp %140 : vector<8x384xf32>
    %cst_29 = arith.constant 1.000000e+00 : f32
    %142 = vector.broadcast %cst_29 : f32 to vector<8x384xf32>
    %143 = arith.addf %142, %141 : vector<8x384xf32>
    %144 = arith.divf %142, %143 : vector<8x384xf32>
    %145 = vector.extract_strided_slice %138 {offsets = [0, 384], sizes = [8, 128], strides = [1, 1]} : vector<8x512xf32> to vector<8x128xf32>
    %146 = math.tanh %145 : vector<8x128xf32>
    %147 = vector.extract_strided_slice %144 {offsets = [0, 0], sizes = [8, 128], strides = [1, 1]} : vector<8x384xf32> to vector<8x128xf32>
    %148 = vector.extract_strided_slice %144 {offsets = [0, 128], sizes = [8, 128], strides = [1, 1]} : vector<8x384xf32> to vector<8x128xf32>
    %149 = vector.extract_strided_slice %144 {offsets = [0, 256], sizes = [8, 128], strides = [1, 1]} : vector<8x384xf32> to vector<8x128xf32>
    %150 = arith.mulf %148, %127 : vector<8x128xf32>
    %151 = arith.mulf %147, %146 : vector<8x128xf32>
    %152 = arith.addf %150, %151 : vector<8x128xf32>
    %153 = math.tanh %152 : vector<8x128xf32>
    %154 = arith.mulf %149, %153 : vector<8x128xf32>
    %155 = vector.extract_strided_slice %0 {offsets = [0, 6], sizes = [8, 1], strides = [1, 1]} : vector<8x8xf32> to vector<8x1xf32>
    %156 = vector.broadcast %155 : vector<8x1xf32> to vector<8x512xf32>
    %157 = vector.broadcast %1 : vector<1x512xf32> to vector<8x512xf32>
    %158 = arith.mulf %156, %157 : vector<8x512xf32>
    %159 = vector.broadcast %2 : vector<1x512xf32> to vector<8x512xf32>
    %160 = arith.addf %158, %159 : vector<8x512xf32>
    %c0_30 = arith.constant 0 : index
    %c0_31 = arith.constant 0 : index
    %161 = vector.load %arg3[%c0_30, %c0_31] : memref<128x512xf32, #tpu.memory_space<vmem>>, vector<128x512xf32>
    %cst_32 = arith.constant dense<0.000000e+00> : vector<8x512xf32>
    %162 = tpu.matmul %154, %161, %cst_32 {dimension_numbers = #tpu.dot_dimension_numbers<[1], [0], [0], [1], [0, 0, 1, 1], [], []>} : vector<8x128xf32>, vector<128x512xf32>, vector<8x512xf32> -> vector<8x512xf32>
    %163 = arith.addf %160, %162 : vector<8x512xf32>
    %164 = vector.extract_strided_slice %163 {offsets = [0, 0], sizes = [8, 384], strides = [1, 1]} : vector<8x512xf32> to vector<8x384xf32>
    %165 = arith.negf %164 : vector<8x384xf32>
    %166 = math.exp %165 : vector<8x384xf32>
    %cst_33 = arith.constant 1.000000e+00 : f32
    %167 = vector.broadcast %cst_33 : f32 to vector<8x384xf32>
    %168 = arith.addf %167, %166 : vector<8x384xf32>
    %169 = arith.divf %167, %168 : vector<8x384xf32>
    %170 = vector.extract_strided_slice %163 {offsets = [0, 384], sizes = [8, 128], strides = [1, 1]} : vector<8x512xf32> to vector<8x128xf32>
    %171 = math.tanh %170 : vector<8x128xf32>
    %172 = vector.extract_strided_slice %169 {offsets = [0, 0], sizes = [8, 128], strides = [1, 1]} : vector<8x384xf32> to vector<8x128xf32>
    %173 = vector.extract_strided_slice %169 {offsets = [0, 128], sizes = [8, 128], strides = [1, 1]} : vector<8x384xf32> to vector<8x128xf32>
    %174 = vector.extract_strided_slice %169 {offsets = [0, 256], sizes = [8, 128], strides = [1, 1]} : vector<8x384xf32> to vector<8x128xf32>
    %175 = arith.mulf %173, %152 : vector<8x128xf32>
    %176 = arith.mulf %172, %171 : vector<8x128xf32>
    %177 = arith.addf %175, %176 : vector<8x128xf32>
    %178 = math.tanh %177 : vector<8x128xf32>
    %179 = arith.mulf %174, %178 : vector<8x128xf32>
    %180 = vector.extract_strided_slice %0 {offsets = [0, 7], sizes = [8, 1], strides = [1, 1]} : vector<8x8xf32> to vector<8x1xf32>
    %181 = vector.broadcast %180 : vector<8x1xf32> to vector<8x512xf32>
    %182 = vector.broadcast %1 : vector<1x512xf32> to vector<8x512xf32>
    %183 = arith.mulf %181, %182 : vector<8x512xf32>
    %184 = vector.broadcast %2 : vector<1x512xf32> to vector<8x512xf32>
    %185 = arith.addf %183, %184 : vector<8x512xf32>
    %c0_34 = arith.constant 0 : index
    %c0_35 = arith.constant 0 : index
    %186 = vector.load %arg3[%c0_34, %c0_35] : memref<128x512xf32, #tpu.memory_space<vmem>>, vector<128x512xf32>
    %cst_36 = arith.constant dense<0.000000e+00> : vector<8x512xf32>
    %187 = tpu.matmul %179, %186, %cst_36 {dimension_numbers = #tpu.dot_dimension_numbers<[1], [0], [0], [1], [0, 0, 1, 1], [], []>} : vector<8x128xf32>, vector<128x512xf32>, vector<8x512xf32> -> vector<8x512xf32>
    %188 = arith.addf %185, %187 : vector<8x512xf32>
    %189 = vector.extract_strided_slice %188 {offsets = [0, 0], sizes = [8, 384], strides = [1, 1]} : vector<8x512xf32> to vector<8x384xf32>
    %190 = arith.negf %189 : vector<8x384xf32>
    %191 = math.exp %190 : vector<8x384xf32>
    %cst_37 = arith.constant 1.000000e+00 : f32
    %192 = vector.broadcast %cst_37 : f32 to vector<8x384xf32>
    %193 = arith.addf %192, %191 : vector<8x384xf32>
    %194 = arith.divf %192, %193 : vector<8x384xf32>
    %195 = vector.extract_strided_slice %188 {offsets = [0, 384], sizes = [8, 128], strides = [1, 1]} : vector<8x512xf32> to vector<8x128xf32>
    %196 = math.tanh %195 : vector<8x128xf32>
    %197 = vector.extract_strided_slice %194 {offsets = [0, 0], sizes = [8, 128], strides = [1, 1]} : vector<8x384xf32> to vector<8x128xf32>
    %198 = vector.extract_strided_slice %194 {offsets = [0, 128], sizes = [8, 128], strides = [1, 1]} : vector<8x384xf32> to vector<8x128xf32>
    %199 = vector.extract_strided_slice %194 {offsets = [0, 256], sizes = [8, 128], strides = [1, 1]} : vector<8x384xf32> to vector<8x128xf32>
    %200 = arith.mulf %198, %177 : vector<8x128xf32>
    %201 = arith.mulf %197, %196 : vector<8x128xf32>
    %202 = arith.addf %200, %201 : vector<8x128xf32>
    %203 = math.tanh %202 : vector<8x128xf32>
    %204 = arith.mulf %199, %203 : vector<8x128xf32>
    %c0_38 = arith.constant 0 : index
    %c0_39 = arith.constant 0 : index
    %205 = vector.load %arg5[%c0_38, %c0_39] : memref<8x128xf32, #tpu.memory_space<vmem>>, vector<8x128xf32>
    tpu.vector_store %arg5[%c0_38, %c0_39], %204 {strides = array<i32>} : memref<8x128xf32, #tpu.memory_space<vmem>>, vector<8x128xf32>,
    return
  }
  func.func @transform_0(%arg0: i32) -> (i32, i32) {
    %c0_i32 = arith.constant 0 : i32
    %c0_i32_0 = arith.constant 0 : i32
    return %arg0, %c0_i32 : i32, i32
  }
  func.func @transform_1(%arg0: i32) -> (i32, i32) {
    %c0_i32 = arith.constant 0 : i32
    %c0_i32_0 = arith.constant 0 : i32
    %c0_i32_1 = arith.constant 0 : i32
    return %c0_i32, %c0_i32_0 : i32, i32
  }
  func.func @transform_2(%arg0: i32) -> (i32, i32) {
    %c0_i32 = arith.constant 0 : i32
    %c0_i32_0 = arith.constant 0 : i32
    %c0_i32_1 = arith.constant 0 : i32
    return %c0_i32, %c0_i32_0 : i32, i32
  }
  func.func @transform_3(%arg0: i32) -> (i32, i32) {
    %c0_i32 = arith.constant 0 : i32
    %c0_i32_0 = arith.constant 0 : i32
    %c0_i32_1 = arith.constant 0 : i32
    return %c0_i32, %c0_i32_0 : i32, i32
  }
  func.func @transform_4(%arg0: i32) -> (i32, i32) {
    %c0_i32 = arith.constant 0 : i32
    %c0_i32_0 = arith.constant 0 : i32
    return %arg0, %c0_i32 : i32, i32
  }
}

</mosaic_0001>

<bundles_post_ra>
// kernel: _encoder_forward_impl.1
= control target key start
LH: loop header
LB: loop body
LE: loop exit
PB: predicated region body
PF: predicated region fallthrough
CT: control target
= control target key end

     0   :  { %9 = vsyncpa [#allocation3], 0  ;;  %s1863_s15 = smov [#allocation2]   ;;  %s2820_s0 = inlined_call_operand.vmem [shape: f32[8,8], index: 0, kind: input, shape index: {}]   ;;  %s2821_s1 = inlined_call_operand.vmem [shape: f32[1,512], index: 1, kind: input, shape index: {}]   ;;  %s2822_s2 = inlined_call_operand.hbm [shape: f32[128,512], index: 2, kind: input, shape index: {}]   ;;  %s2823_s3 = inlined_call_operand.vmem [shape: f32[1,512], index: 3, kind: input, shape index: {}]   ;;  %s2824_s4 = inlined_call_operand.vmem [shape: f32[8,128], index: 4, kind: output, shape index: {}]  }
   0x1   :  { %s19_s16 = sshll.u32 %s1863_s15, 4  ;;  %s20_s16 = int_to_ptr.vmem [resolvable:$true] %s19_s16 }
   0x2   :  { %s1849_s17 = scalar_lea.vmem %s20_s16, 8192  ;;  %p1854_p1 = scmp.lt.s32.totalorder %s20_s16, %s20_s16 }
   0x3   :  { %p1850_p0 = scmp.ne.s32.totalorder %s20_s16, %s1849_s17  ;;  %p1855_p2 = scmp.lt.s32.totalorder %s1849_s17, %s1849_s17 }
   0x5   :  { %p1856_p3 = por %p1855_p2, %p1854_p1 }
   0x7   :  { %p1857_p4 = pnand %p1856_p3, %p1850_p0 }
   0x9   :  { %1860 = shalt.err (!%p1857_p4)
}
   0xa   :  { %s1864_s18 = smov 512   ;;  %s1865_s19 = smov 32  }
   0xb   :  { %25 = dma.hbm_to_vmem [thread:$0]  %s2822_s2, 8192, %s20_s16, [#allocation3], %s1864_s18, %s1864_s18, %s1865_s19  }
   0xc   :  { %1861 = dma.done.wait [#allocation3], 8192  }
   0xd   :  { %1862 = vsyncadd [#allocation3], 4294959104  ;;  %v2825_v0 = vmov 0.0   ;;  %v1867_v1 = vmov 0   ;;  %v1905_v2 = vld [vmem:[#allocation2 + $0x1e8] sm:$0xff]  ;;  %v1907_v3 = vld [vmem:[#allocation2 + $0x1f8] sm:$0xff] }
   0xe   :  { %217 = vmatprep.mubr.f32.mxu0 %v2825_v0  ;;  %288 = vmatprep.mubr.f32.mxu1 %v2825_v0  ;;  %2940 = vst [vmem:[#allocation5_spill] sm:$0xff] %v1905_v2  ;;  %2941 = vst [vmem:[#allocation6_spill] sm:$0xff] %v1907_v3  ;;  %v1909_v4 = vld [vmem:[#allocation2 + $0x1e0] sm:$0xff]  ;;  %v1913_v5 = vld [vmem:[#allocation2 + $0x1f0] sm:$0xff] }
   0xf   :  { %1639 = vset.pattern.permute.xlu0 %v1867_v1  ;;  %153 = vmatprep.subr.mxu0 %v1905_v2  ;;  %v1915_v6 = vld [vmem:[#allocation2 + $0x1c8] sm:$0xff]  ;;  %v1917_v7 = vld [vmem:[#allocation2 + $0x1d8] sm:$0xff]  ;;  %v1921_v8 = vld [vmem:[#allocation2 + $0x1c0] sm:$0xff] }
  0x10   :  { %224 = vmatprep.subr.mxu1 %v1907_v3  ;;  %154 = vmatpush1.msra.mxu0 %v1909_v4  ;;  %v1923_v9 = vld [vmem:[#allocation2 + $0x1d0] sm:$0xff]  ;;  %v1925_v10 = vld [vmem:[#allocation2 + $0x1a8] sm:$0xff]  ;;  %v1929_v11 = vld [vmem:[#allocation2 + $0x1b8] sm:$0xff] }
  0x11   :  { %225 = vmatpush1.msra.mxu1 %v1913_v5  ;;  %155 = vmatprep.subr.mxu0 %v1915_v6  ;;  %v1931_v12 = vld [vmem:[#allocation2 + $0x1a0] sm:$0xff]  ;;  %v1933_v13 = vld [vmem:[#allocation2 + $0x1b0] sm:$0xff]  ;;  %v1937_v14 = vld [vmem:[#allocation2 + $0x188] sm:$0xff] }
  0x12   :  { %226 = vmatprep.subr.mxu1 %v1917_v7  ;;  %156 = vmatpush1.msra.mxu0 %v1921_v8  ;;  %v1939_v15 = vld [vmem:[#allocation2 + $0x198] sm:$0xff]  ;;  %v1943_v16 = vld [vmem:[#allocation2 + $0x180] sm:$0xff]  ;;  %v1945_v17 = vld [vmem:[#allocation2 + $0x190] sm:$0xff] }
  0x13   :  { %227 = vmatpush1.msra.mxu1 %v1923_v9  ;;  %157 = vmatprep.subr.mxu0 %v1925_v10  ;;  %v1949_v18 = vld [vmem:[#allocation2 + $0x168] sm:$0xff]  ;;  %v1951_v19 = vld [vmem:[#allocation2 + $0x178] sm:$0xff]  ;;  %v1955_v20 = vld [vmem:[#allocation2 + $0x160] sm:$0xff] }
  0x14   :  { %228 = vmatprep.subr.mxu1 %v1929_v11  ;;  %158 = vmatpush1.msra.mxu0 %v1931_v12  ;;  %v1957_v21 = vld [vmem:[#allocation2 + $0x170] sm:$0xff]  ;;  %v1961_v22 = vld [vmem:[#allocation2 + $0x148] sm:$0xff]  ;;  %v1963_v23 = vld [vmem:[#allocation2 + $0x158] sm:$0xff] }
  0x15   :  { %229 = vmatpush1.msra.mxu1 %v1933_v13  ;;  %159 = vmatprep.subr.mxu0 %v1937_v14  ;;  %v1967_v24 = vld [vmem:[#allocation2 + $0x140] sm:$0xff]  ;;  %v1969_v25 = vld [vmem:[#allocation2 + $0x150] sm:$0xff]  ;;  %v1973_v26 = vld [vmem:[#allocation2 + $0x128] sm:$0xff] }
  0x16   :  { %230 = vmatprep.subr.mxu1 %v1939_v15  ;;  %160 = vmatpush1.msra.mxu0 %v1943_v16  ;;  %v1975_v27 = vld [vmem:[#allocation2 + $0x138] sm:$0xff]  ;;  %v1979_v28 = vld [vmem:[#allocation2 + $0x120] sm:$0xff]  ;;  %v1981_v29 = vld [vmem:[#allocation2 + $0x130] sm:$0xff] }
  0x17   :  { %231 = vmatpush1.msra.mxu1 %v1945_v17  ;;  %161 = vmatprep.subr.mxu0 %v1949_v18  ;;  %v1985_v30 = vld [vmem:[#allocation2 + $0x108] sm:$0xff]  ;;  %v1987_v31 = vld [vmem:[#allocation2 + $0x118] sm:$0xff]  ;;  %v1991_v32 = vld [vmem:[#allocation2 + $0x100] sm:$0xff] }
  0x18   :  { %232 = vmatprep.subr.mxu1 %v1951_v19  ;;  %162 = vmatpush1.msra.mxu0 %v1955_v20  ;;  %v1993_v33 = vld [vmem:[#allocation2 + $0x110] sm:$0xff]  ;;  %v1997_v34 = vld [vmem:[#allocation2 + $0xe8] sm:$0xff]  ;;  %v1999_v35 = vld [vmem:[#allocation2 + $0xf8] sm:$0xff] }
  0x19   :  { %233 = vmatpush1.msra.mxu1 %v1957_v21  ;;  %163 = vmatprep.subr.mxu0 %v1961_v22  ;;  %v2003_v36 = vld [vmem:[#allocation2 + $0xe0] sm:$0xff]  ;;  %v2005_v37 = vld [vmem:[#allocation2 + $0xf0] sm:$0xff]  ;;  %v2009_v38 = vld [vmem:[#allocation2 + $0xc8] sm:$0xff] }
  0x1a   :  { %234 = vmatprep.subr.mxu1 %v1963_v23  ;;  %164 = vmatpush1.msra.mxu0 %v1967_v24  ;;  %v2011_v39 = vld [vmem:[#allocation2 + $0xd8] sm:$0xff]  ;;  %v2015_v40 = vld [vmem:[#allocation2 + $0xc0] sm:$0xff]  ;;  %v2017_v41 = vld [vmem:[#allocation2 + $0xd0] sm:$0xff] }
  0x1b   :  { %235 = vmatpush1.msra.mxu1 %v1969_v25  ;;  %165 = vmatprep.subr.mxu0 %v1973_v26  ;;  %v2021_v42 = vld [vmem:[#allocation2 + $0xa8] sm:$0xff]  ;;  %v2023_v43 = vld [vmem:[#allocation2 + $0xb8] sm:$0xff]  ;;  %v2027_v44 = vld [vmem:[#allocation2 + $0xa0] sm:$0xff] }
  0x1c   :  { %236 = vmatprep.subr.mxu1 %v1975_v27  ;;  %166 = vmatpush1.msra.mxu0 %v1979_v28  ;;  %v2029_v45 = vld [vmem:[#allocation2 + $0xb0] sm:$0xff]  ;;  %v2033_v46 = vld [vmem:[#allocation2 + $0x88] sm:$0xff]  ;;  %v2035_v47 = vld [vmem:[#allocation2 + $0x98] sm:$0xff] }
  0x1d   :  { %237 = vmatpush1.msra.mxu1 %v1981_v29  ;;  %167 = vmatprep.subr.mxu0 %v1985_v30  ;;  %2942 = vst [vmem:[#allocation7_spill] sm:$0xff] %v2029_v45  ;;  %2943 = vst [vmem:[#allocation8_spill] sm:$0xff] %v2033_v46  ;;  %v2039_v48 = vld [vmem:[#allocation2 + $0x80] sm:$0xff]  ;;  %v2041_v49 = vld [vmem:[#allocation2 + $0x90] sm:$0xff] }
  0x1e   :  { %238 = vmatprep.subr.mxu1 %v1987_v31  ;;  %168 = vmatpush1.msra.mxu0 %v1991_v32  ;;  %2944 = vst [vmem:[#allocation9_spill] sm:$0xff] %v2035_v47  ;;  %2945 = vst [vmem:[#allocation10_spill] sm:$0xff] %v2039_v48  ;;  %v2045_v50 = vld [vmem:[#allocation2 + $0x68] sm:$0xff]  ;;  %v2047_v51 = vld [vmem:[#allocation2 + $0x78] sm:$0xff] }
  0x1f   :  { %239 = vmatpush1.msra.mxu1 %v1993_v33  ;;  %169 = vmatprep.subr.mxu0 %v1997_v34  ;;  %2946 = vst [vmem:[#allocation11_spill] sm:$0xff] %v2041_v49  ;;  %2947 = vst [vmem:[#allocation12_spill] sm:$0xff] %v2045_v50  ;;  %v2051_v52 = vld [vmem:[#allocation2 + $0x60] sm:$0xff]  ;;  %v2053_v53 = vld [vmem:[#allocation2 + $0x70] sm:$0xff] }
  0x20   :  { %240 = vmatprep.subr.mxu1 %v1999_v35  ;;  %170 = vmatpush1.msra.mxu0 %v2003_v36  ;;  %2948 = vst [vmem:[#allocation13_spill] sm:$0xff] %v2047_v51  ;;  %2949 = vst [vmem:[#allocation14_spill] sm:$0xff] %v2051_v52  ;;  %v2057_v54 = vld [vmem:[#allocation2 + $0x48] sm:$0xff]  ;;  %v2059_v55 = vld [vmem:[#allocation2 + $0x58] sm:$0xff] }
  0x21   :  { %241 = vmatpush1.msra.mxu1 %v2005_v37  ;;  %171 = vmatprep.subr.mxu0 %v2009_v38  ;;  %2950 = vst [vmem:[#allocation15_spill] sm:$0xff] %v2053_v53  ;;  %2951 = vst [vmem:[#allocation16_spill] sm:$0xff] %v2057_v54  ;;  %v2063_v56 = vld [vmem:[#allocation2 + $0x40] sm:$0xff]  ;;  %v2065_v57 = vld [vmem:[#allocation2 + $0x50] sm:$0xff] }
  0x22   :  { %242 = vmatprep.subr.mxu1 %v2011_v39  ;;  %172 = vmatpush1.msra.mxu0 %v2015_v40  ;;  %2952 = vst [vmem:[#allocation17_spill] sm:$0xff] %v2059_v55  ;;  %2953 = vst [vmem:[#allocation18_spill] sm:$0xff] %v2063_v56  ;;  %v2069_v58 = vld [vmem:[#allocation2 + $0x28] sm:$0xff]  ;;  %v2071_v59 = vld [vmem:[#allocation2 + $0x38] sm:$0xff] }
  0x23   :  { %243 = vmatpush1.msra.mxu1 %v2017_v41  ;;  %173 = vmatprep.subr.mxu0 %v2021_v42  ;;  %2954 = vst [vmem:[#allocation19_spill] sm:$0xff] %v2065_v57  ;;  %2955 = vst [vmem:[#allocation20_spill] sm:$0xff] %v2069_v58  ;;  %v2075_v60 = vld [vmem:[#allocation2 + $0x20] sm:$0xff]  ;;  %v2077_v61 = vld [vmem:[#allocation2 + $0x30] sm:$0xff] }
  0x24   :  { %244 = vmatprep.subr.mxu1 %v2023_v43  ;;  %174 = vmatpush1.msra.mxu0 %v2027_v44  ;;  %2956 = vst [vmem:[#allocation21_spill] sm:$0xff] %v2071_v59  ;;  %2957 = vst [vmem:[#allocation22_spill] sm:$0xff] %v2075_v60  ;;  %v2081_v62 = vld [vmem:[#allocation2 + $0x8] sm:$0xff]  ;;  %v2083_v63 = vld [vmem:[#allocation2 + $0x18] sm:$0xff] }
  0x25   :  { %245 = vmatpush1.msra.mxu1 %v2029_v45  ;;  %175 = vmatprep.subr.mxu0 %v2033_v46  ;;  %2958 = vst [vmem:[#allocation23_spill] sm:$0xff] %v2077_v61  ;;  %2959 = vst [vmem:[#allocation24_spill] sm:$0xff] %v2081_v62  ;;  %v2087_v1 = vld [vmem:[#allocation2] sm:$0xff]  ;;  %v2089_v0 = vld [vmem:[#allocation2 + $0x10] sm:$0xff] }
  0x26   :  { %246 = vmatprep.subr.mxu1 %v2035_v47  ;;  %176 = vmatpush1.msra.mxu0 %v2039_v48  ;;  %2960 = vst [vmem:[#allocation25_spill] sm:$0xff] %v2083_v63  ;;  %2961 = vst [vmem:[#allocation26_spill] sm:$0xff] %v2087_v1 }
  0x27   :  { %247 = vmatpush1.msra.mxu1 %v2041_v49  ;;  %177 = vmatprep.subr.mxu0 %v2045_v50  ;;  %2962 = vst [vmem:[#allocation27_spill] sm:$0xff] %v2089_v0 }
  0x28   :  { %248 = vmatprep.subr.mxu1 %v2047_v51  ;;  %178 = vmatpush1.msra.mxu0 %v2051_v52 }
  0x29   :  { %249 = vmatpush1.msra.mxu1 %v2053_v53  ;;  %179 = vmatprep.subr.mxu0 %v2057_v54 }
  0x2a   :  { %250 = vmatprep.subr.mxu1 %v2059_v55  ;;  %180 = vmatpush1.msra.mxu0 %v2063_v56 }
  0x2b   :  { %251 = vmatpush1.msra.mxu1 %v2065_v57  ;;  %181 = vmatprep.subr.mxu0 %v2069_v58  ;;  %v2098_v57 = vld [vmem:[%s2820_s0] sm:$0xff] }
  0x2c   :  { %252 = vmatprep.subr.mxu1 %v2071_v59  ;;  %182 = vmatpush1.msra.mxu0 %v2075_v60  ;;  %2963 = vst [vmem:[#allocation28_spill] sm:$0xff] %v2098_v57  ;;  %v2964_v59 = vmov 0.0  }
  0x2d   :  { %253 = vmatpush1.msra.mxu1 %v2077_v61  ;;  %183 = vmatprep.subr.mxu0 %v2081_v62 }
  0x2e   :  { %254 = vmatprep.subr.mxu1 %v2083_v63  ;;  %184 = vmatpush1.msra.mxu0 %v2087_v1 }
  0x2f   :  { %255 = vmatpush1.msra.mxu1 %v2089_v0  ;;  %218 = vmatmul.mubr.f32.vlgmr.msra.gmra.mxu0 %v2964_v59 }
  0x30   :  { %289 = vmatmul.mubr.f32.vlgmr.msra.gmra.mxu1 %v2964_v59  ;;  %36 = vperm.xlu0 %1639, %v2098_v57  }
  0x31   :  { %335 = vmatprep.subr.mxu0 %v1905_v2  ;;  %406 = vmatprep.subr.mxu1 %v1907_v3 }
  0x32   :  { %336 = vmatpush1.msra.mxu0 %v1909_v4  ;;  %407 = vmatpush1.msra.mxu1 %v1913_v5 }
  0x33   :  { %337 = vmatprep.subr.mxu0 %v1915_v6  ;;  %408 = vmatprep.subr.mxu1 %v1917_v7 }
  0x34   :  { %338 = vmatpush1.msra.mxu0 %v1921_v8  ;;  %409 = vmatpush1.msra.mxu1 %v1923_v9 }
  0x35   :  { %339 = vmatprep.subr.mxu0 %v1925_v10  ;;  %410 = vmatprep.subr.mxu1 %v1929_v11 }
  0x36   :  { %340 = vmatpush1.msra.mxu0 %v1931_v12  ;;  %411 = vmatpush1.msra.mxu1 %v1933_v13 }
  0x37   :  { %341 = vmatprep.subr.mxu0 %v1937_v14  ;;  %412 = vmatprep.subr.mxu1 %v1939_v15 }
  0x38   :  { %342 = vmatpush1.msra.mxu0 %v1943_v16  ;;  %413 = vmatpush1.msra.mxu1 %v1945_v17 }
  0x39   :  { %343 = vmatprep.subr.mxu0 %v1949_v18  ;;  %414 = vmatprep.subr.mxu1 %v1951_v19 }
  0x3a   :  { %344 = vmatpush1.msra.mxu0 %v1955_v20  ;;  %415 = vmatpush1.msra.mxu1 %v1957_v21 }
  0x3b   :  { %345 = vmatprep.subr.mxu0 %v1961_v22  ;;  %416 = vmatprep.subr.mxu1 %v1963_v23 }
  0x3c   :  { %346 = vmatpush1.msra.mxu0 %v1967_v24  ;;  %417 = vmatpush1.msra.mxu1 %v1969_v25 }
  0x3d   :  { %347 = vmatprep.subr.mxu0 %v1973_v26  ;;  %418 = vmatprep.subr.mxu1 %v1975_v27 }
  0x3e   :  { %348 = vmatpush1.msra.mxu0 %v1979_v28  ;;  %419 = vmatpush1.msra.mxu1 %v1981_v29 }
  0x3f   :  { %349 = vmatprep.subr.mxu0 %v1985_v30  ;;  %420 = vmatprep.subr.mxu1 %v1987_v31 }
  0x40   :  { %350 = vmatpush1.msra.mxu0 %v1991_v32  ;;  %421 = vmatpush1.msra.mxu1 %v1993_v33 }
  0x41   :  { %351 = vmatprep.subr.mxu0 %v1997_v34  ;;  %422 = vmatprep.subr.mxu1 %v1999_v35 }
  0x42   :  { %352 = vmatpush1.msra.mxu0 %v2003_v36  ;;  %423 = vmatpush1.msra.mxu1 %v2005_v37 }
  0x43   :  { %353 = vmatprep.subr.mxu0 %v2009_v38  ;;  %424 = vmatprep.subr.mxu1 %v2011_v39 }
  0x44   :  { %354 = vmatpush1.msra.mxu0 %v2015_v40  ;;  %425 = vmatpush1.msra.mxu1 %v2017_v41 }
  0x45   :  { %355 = vmatprep.subr.mxu0 %v2021_v42  ;;  %426 = vmatprep.subr.mxu1 %v2023_v43 }
  0x46   :  { %356 = vmatpush1.msra.mxu0 %v2027_v44  ;;  %427 = vmatpush1.msra.mxu1 %v2029_v45 }
  0x47   :  { %357 = vmatprep.subr.mxu0 %v2033_v46  ;;  %428 = vmatprep.subr.mxu1 %v2035_v47  ;;  %v2965_v46 = vld [vmem:[#allocation19_spill] sm:$0xff] }
  0x48   :  { %358 = vmatpush1.msra.mxu0 %v2039_v48  ;;  %429 = vmatpush1.msra.mxu1 %v2041_v49  ;;  %v2966_v48 = vld [vmem:[#allocation21_spill] sm:$0xff] }
  0x49   :  { %359 = vmatprep.subr.mxu0 %v2045_v50  ;;  %430 = vmatprep.subr.mxu1 %v2047_v51 }
  0x4a   :  { %360 = vmatpush1.msra.mxu0 %v2051_v52  ;;  %431 = vmatpush1.msra.mxu1 %v2053_v53 }
  0x4b   :  { %361 = vmatprep.subr.mxu0 %v2057_v54  ;;  %432 = vmatprep.subr.mxu1 %v2059_v55 }
  0x4c   :  { %362 = vmatpush1.msra.mxu0 %v2063_v56  ;;  %433 = vmatpush1.msra.mxu1 %v2965_v46 }
  0x4d   :  { %363 = vmatprep.subr.mxu0 %v2069_v58  ;;  %434 = vmatprep.subr.mxu1 %v2966_v48  ;;  %v1868_v48 = vmov 1  }
  0x4e   :  { %364 = vmatpush1.msra.mxu0 %v2075_v60  ;;  %435 = vmatpush1.msra.mxu1 %v2077_v61  ;;  %v40_v61 = vlaneseq }
  0x4f   :  { %365 = vmatprep.subr.mxu0 %v2081_v62  ;;  %436 = vmatprep.subr.mxu1 %v2083_v63 }
  0x50   :  { %366 = vmatpush1.msra.mxu0 %v2087_v1  ;;  %399 = vmatprep.mubr.f32.mxu0 %v2964_v59  ;;  %v41_v62 = vshrl.u32 %v40_v61, 7  ;;  %v32_v1 = vld [vmem:[%s2821_s1] sm:$0xf] }
  0x51   :  { %437 = vmatpush1.msra.mxu1 %v2089_v0  ;;  %470 = vmatprep.mubr.f32.mxu1 %v2964_v59 }
  0x52   :  { %517 = vmatprep.subr.mxu0 %v1905_v2  ;;  %588 = vmatprep.subr.mxu1 %v1907_v3  ;;  %v42_v60 = vsub.s32 0, %v41_v62  ;;  %v46_v63 = vsub.s32 1, %v41_v62  ;;  %v33_v2 = vld [vmem:[%s2823_s3] sm:$0xf]  ;;  %v50_v46 = vsub.s32 2, %v41_v62  ;;  %v54_v50 = vsub.s32 3, %v41_v62 }
  0x53   :  { %1640 = vset.pattern.permute.xlu0 %v1868_v48 }
  0x54   :  { %324 = vperm.xlu0 %1640, %v2098_v57   ;;  %v2177_v58 = vrot.slane %v32_v1, %v42_v60  ;;  %v2182_v3 = vrot.slane %v32_v1, %v46_v63  ;;  %v2185_v57 = vrot.slane %v33_v2, %v42_v60  ;;  %v2188_v59 = vrot.slane %v33_v2, %v46_v63 }
  0x55   :  { %v2192_v53 = vrot.slane %v32_v1, %v50_v46 }
  0x56   :  { %2967 = vst [vmem:[#allocation29_spill] sm:$0xff] %v2177_v58  ;;  %2968 = vst [vmem:[#allocation30_spill] sm:$0xff] %v2182_v3 }
  0x57   :  { %2969 = vst [vmem:[#allocation31_spill] sm:$0xff] %v2185_v57  ;;  %2970 = vst [vmem:[#allocation32_spill] sm:$0xff] %v2188_v59 }
  0x58   :  { %2971 = vst [vmem:[#allocation33_spill] sm:$0xff] %v2192_v53 }
  0xab   :  { %v37_v0 = vpop.permute.xlu0 %36 }
  0xac   :  { %v60_v48 = vmul.f32 %v2177_v58, %v37_v0  ;;  %v61_v61 = vmul.f32 %v2182_v3, %v37_v0  ;;  %v62_v60 = vmul.f32 %v2192_v53, %v37_v0  ;;  %v2195_v58 = vrot.slane %v33_v2, %v50_v46 }
  0xad   :  { %v2197_v3 = vrot.slane %v32_v1, %v54_v50 }
  0xae   :  { %v85_v56 = vadd.f32 %v2185_v57, %v60_v48  ;;  %v86_v55 = vadd.f32 %v2188_v59, %v61_v61  ;;  %v87_v48 = vadd.f32 %v2195_v58, %v62_v60  ;;  %v2201_v59 = vrot.slane %v33_v2, %v54_v50 }
  0xaf   :  { %v63_v61 = vmul.f32 %v2197_v3, %v37_v0 }
  0xef   :  { %v219_v54 = vpop.f32.mrf.mxu0 }
  0xf0   :  { %v295_v52 = vadd.f32 %v219_v54, %v85_v56  ;;  %v290_v54 = vpop.f32.mrf.mxu1 }
  0xf1   :  { %v221_v51 = vpop.f32.mrf.mxu0  ;;  %v297_v56 = vadd.f32 %v290_v54, %v87_v48 }
  0xf2   :  { %v1603_v49 = vmul.f32 -1.442695, %v295_v52  ;;  %v296_v47 = vadd.f32 %v221_v51, %v86_v55  ;;  %v88_v52 = vadd.f32 %v2201_v59, %v63_v61  ;;  %v292_v51 = vpop.f32.mrf.mxu1 }
  0xf3   :  { %v1605_v55 = vmul.f32 -1.442695, %v297_v56 }
  0xf4   :  { %1648 = vpow2.f32 %v1603_v49  ;;  %v1604_v63 = vmul.f32 -1.442695, %v296_v47  ;;  %v298_v46 = vadd.f32 %v292_v51, %v88_v52  ;;  %v2973_v51 = vld [vmem:[#allocation9_spill] sm:$0xff] }
  0xf6   :  { %1650 = vpow2.f32 %v1604_v63 }
  0xf7   :  { %1652 = vpow2.f32 %v1605_v55  ;;  %v2974_v55 = vld [vmem:[#allocation10_spill] sm:$0xff] }
 0x101   :  { %v1649_v62 = vpop.eup %1648 }
 0x102   :  { %v308_v53 = vadd.f32 1.0, %v1649_v62  ;;  %v2975_v62 = vld [vmem:[#allocation11_spill] sm:$0xff] }
 0x103   :  { %v1651_v49 = vpop.eup %1650 }
 0x104   :  { %1654 = vrcp.f32 %v308_v53  ;;  %v309_v47 = vadd.f32 1.0, %v1651_v49  ;;  %v1653_v1 = vpop.eup %1652  ;;  %v2972_v53 = vld [vmem:[#allocation8_spill] sm:$0xff]  ;;  %v2977_v49 = vld [vmem:[#allocation13_spill] sm:$0xff] }
 0x105   :  { %1656 = vtanh.f32 %v298_v46  ;;  %v310_v50 = vadd.f32 1.0, %v1653_v1  ;;  %v2976_v46 = vld [vmem:[#allocation12_spill] sm:$0xff]  ;;  %v2979_v1 = vld [vmem:[#allocation15_spill] sm:$0xff] }
 0x106   :  { %1658 = vrcp.f32 %v309_v47  ;;  %v2978_v47 = vld [vmem:[#allocation14_spill] sm:$0xff] }
 0x107   :  { %1660 = vrcp.f32 %v310_v50  ;;  %v2983_v50 = vld [vmem:[#allocation19_spill] sm:$0xff] }
 0x111   :  { %v1655_v60 = vpop.eup %1654 }
 0x112   :  { %v1657_v0 = vpop.eup %1656 }
 0x113   :  { %v1659_v2 = vpop.eup %1658  ;;  %v319_v48 = vmul.f32 %v1657_v0, %v1655_v60  ;;  %v2980_v60 = vld [vmem:[#allocation16_spill] sm:$0xff]  ;;  %v2981_v0 = vld [vmem:[#allocation17_spill] sm:$0xff] }
 0x114   :  { %v318_v63 = vmul.f32 0.0, %v1659_v2  ;;  %v1661_v61 = vpop.eup %1660  ;;  %v2982_v2 = vld [vmem:[#allocation18_spill] sm:$0xff] }
 0x116   :  { %v2204_v54 = vadd.f32 %v319_v48, %v318_v63  ;;  %v2984_v63 = vld [vmem:[#allocation20_spill] sm:$0xff]  ;;  %v2985_v48 = vld [vmem:[#allocation21_spill] sm:$0xff] }
 0x118   :  { %1662 = vtanh.f32 %v2204_v54 }
 0x125   :  { %v1663_v56 = vpop.eup %1662 }
 0x126   :  { %v322_v52 = vmul.f32 %v1663_v56, %v1661_v61  ;;  %v2986_v61 = vld [vmem:[#allocation22_spill] sm:$0xff]  ;;  %v2987_v56 = vld [vmem:[#allocation23_spill] sm:$0xff] }
 0x128   :  { %400 = vmatmul.mubr.f32.vlgmr.msra.gmra.mxu0 %v322_v52  ;;  %471 = vmatmul.mubr.f32.vlgmr.msra.gmra.mxu1 %v322_v52  ;;  %v2988_v52 = vld [vmem:[#allocation24_spill] sm:$0xff] }
 0x129   :  { %518 = vmatpush1.msra.mxu0 %v1909_v4  ;;  %589 = vmatpush1.msra.mxu1 %v1913_v5 }
 0x12a   :  { %519 = vmatprep.subr.mxu0 %v1915_v6  ;;  %590 = vmatprep.subr.mxu1 %v1917_v7 }
 0x12b   :  { %520 = vmatpush1.msra.mxu0 %v1921_v8  ;;  %591 = vmatpush1.msra.mxu1 %v1923_v9 }
 0x12c   :  { %521 = vmatprep.subr.mxu0 %v1925_v10  ;;  %592 = vmatprep.subr.mxu1 %v1929_v11 }
 0x12d   :  { %522 = vmatpush1.msra.mxu0 %v1931_v12  ;;  %593 = vmatpush1.msra.mxu1 %v1933_v13 }
 0x12e   :  { %523 = vmatprep.subr.mxu0 %v1937_v14  ;;  %594 = vmatprep.subr.mxu1 %v1939_v15 }
 0x12f   :  { %524 = vmatpush1.msra.mxu0 %v1943_v16  ;;  %595 = vmatpush1.msra.mxu1 %v1945_v17 }
 0x130   :  { %525 = vmatprep.subr.mxu0 %v1949_v18  ;;  %596 = vmatprep.subr.mxu1 %v1951_v19 }
 0x131   :  { %526 = vmatpush1.msra.mxu0 %v1955_v20  ;;  %597 = vmatpush1.msra.mxu1 %v1957_v21 }
 0x132   :  { %527 = vmatprep.subr.mxu0 %v1961_v22  ;;  %598 = vmatprep.subr.mxu1 %v1963_v23 }
 0x133   :  { %528 = vmatpush1.msra.mxu0 %v1967_v24  ;;  %599 = vmatpush1.msra.mxu1 %v1969_v25 }
 0x134   :  { %529 = vmatprep.subr.mxu0 %v1973_v26  ;;  %600 = vmatprep.subr.mxu1 %v1975_v27 }
 0x135   :  { %530 = vmatpush1.msra.mxu0 %v1979_v28  ;;  %601 = vmatpush1.msra.mxu1 %v1981_v29 }
 0x136   :  { %531 = vmatprep.subr.mxu0 %v1985_v30  ;;  %602 = vmatprep.subr.mxu1 %v1987_v31 }
 0x137   :  { %532 = vmatpush1.msra.mxu0 %v1991_v32  ;;  %603 = vmatpush1.msra.mxu1 %v1993_v33 }
 0x138   :  { %533 = vmatprep.subr.mxu0 %v1997_v34  ;;  %604 = vmatprep.subr.mxu1 %v1999_v35 }
 0x139   :  { %534 = vmatpush1.msra.mxu0 %v2003_v36  ;;  %605 = vmatpush1.msra.mxu1 %v2005_v37 }
 0x13a   :  { %535 = vmatprep.subr.mxu0 %v2009_v38  ;;  %606 = vmatprep.subr.mxu1 %v2011_v39 }
 0x13b   :  { %536 = vmatpush1.msra.mxu0 %v2015_v40  ;;  %607 = vmatpush1.msra.mxu1 %v2017_v41 }
 0x13c   :  { %537 = vmatprep.subr.mxu0 %v2021_v42  ;;  %608 = vmatprep.subr.mxu1 %v2023_v43 }
 0x13d   :  { %538 = vmatpush1.msra.mxu0 %v2027_v44  ;;  %609 = vmatpush1.msra.mxu1 %v2029_v45 }
 0x13e   :  { %539 = vmatprep.subr.mxu0 %v2972_v53  ;;  %610 = vmatprep.subr.mxu1 %v2973_v51  ;;  %v2999_v53 = vld [vmem:[#allocation33_spill] sm:$0xff] }
 0x13f   :  { %540 = vmatpush1.msra.mxu0 %v2974_v55  ;;  %611 = vmatpush1.msra.mxu1 %v2975_v62 }
 0x140   :  { %541 = vmatprep.subr.mxu0 %v2976_v46  ;;  %612 = vmatprep.subr.mxu1 %v2977_v49  ;;  %v2998_v46 = vld [vmem:[#allocation32_spill] sm:$0xff] }
 0x141   :  { %542 = vmatpush1.msra.mxu0 %v2978_v47  ;;  %613 = vmatpush1.msra.mxu1 %v2979_v1  ;;  %v2989_v47 = vld [vmem:[#allocation25_spill] sm:$0xff]  ;;  %v2990_v1 = vld [vmem:[#allocation26_spill] sm:$0xff] }
 0x142   :  { %543 = vmatprep.subr.mxu0 %v2980_v60  ;;  %614 = vmatprep.subr.mxu1 %v2981_v0  ;;  %v2991_v60 = vmov 0.0   ;;  %v2992_v0 = vld [vmem:[#allocation27_spill] sm:$0xff] }
 0x143   :  { %544 = vmatpush1.msra.mxu0 %v2982_v2  ;;  %615 = vmatpush1.msra.mxu1 %v2983_v50  ;;  %v2993_v50 = vld [vmem:[#allocation5_spill] sm:$0xff] }
 0x144   :  { %545 = vmatprep.subr.mxu0 %v2984_v63  ;;  %616 = vmatprep.subr.mxu1 %v2985_v48  ;;  %v2994_v63 = vld [vmem:[#allocation6_spill] sm:$0xff]  ;;  %v1869_v48 = vmov 2  }
 0x145   :  { %546 = vmatpush1.msra.mxu0 %v2986_v61  ;;  %617 = vmatpush1.msra.mxu1 %v2987_v56  ;;  %v2995_v61 = vld [vmem:[#allocation28_spill] sm:$0xff]  ;;  %v325_v56 = vpop.permute.xlu0 %324 }
 0x146   :  { %547 = vmatprep.subr.mxu0 %v2988_v52  ;;  %618 = vmatprep.subr.mxu1 %v2989_v47  ;;  %v2996_v52 = vld [vmem:[#allocation29_spill] sm:$0xff]  ;;  %v2997_v47 = vld [vmem:[#allocation30_spill] sm:$0xff] }
 0x147   :  { %548 = vmatpush1.msra.mxu0 %v2990_v1  ;;  %581 = vmatprep.mubr.f32.mxu0 %v2991_v60  ;;  %v327_v2 = vmul.f32 %v325_v56, %v2996_v52  ;;  %v328_v49 = vmul.f32 %v325_v56, %v2997_v47  ;;  %v330_v52 = vmul.f32 %v325_v56, %v2197_v3 }
 0x148   :  { %619 = vmatpush1.msra.mxu1 %v2992_v0  ;;  %652 = vmatprep.mubr.f32.mxu1 %v2991_v60 }
 0x149   :  { %699 = vmatprep.subr.mxu0 %v2993_v50  ;;  %770 = vmatprep.subr.mxu1 %v2994_v63  ;;  %v331_v1 = vadd.f32 %v327_v2, %v2185_v57  ;;  %v332_v62 = vadd.f32 %v328_v49, %v2998_v46  ;;  %v329_v63 = vmul.f32 %v325_v56, %v2999_v53 }
 0x14a   :  { %1641 = vset.pattern.permute.xlu1 %v1869_v48  ;;  %v334_v2 = vadd.f32 %v330_v52, %v2201_v59  ;;  %v3001_v52 = vld [vmem:[#allocation8_spill] sm:$0xff] }
 0x14b   :  { %506 = vperm.xlu1 %1641, %v2995_v61   ;;  %v333_v61 = vadd.f32 %v329_v63, %v2195_v58 }
 0x1e8   :  { %v401_v0 = vpop.f32.mrf.mxu0  ;;  %v472_v45 = vpop.f32.mrf.mxu1 }
 0x1e9   :  { %v477_v55 = vadd.f32 %v401_v0, %v331_v1  ;;  %v479_v47 = vadd.f32 %v472_v45, %v333_v61 }
 0x1ea   :  { %v403_v60 = vpop.f32.mrf.mxu0  ;;  %v474_v57 = vpop.f32.mrf.mxu1 }
 0x1eb   :  { %v1606_v51 = vmul.f32 -1.442695, %v477_v55  ;;  %v478_v50 = vadd.f32 %v403_v60, %v332_v62  ;;  %v1608_v49 = vmul.f32 -1.442695, %v479_v47  ;;  %v480_v1 = vadd.f32 %v474_v57, %v334_v2  ;;  %v3002_v2 = vld [vmem:[#allocation9_spill] sm:$0xff] }
 0x1ed   :  { %1664 = vpow2.f32 %v1606_v51  ;;  %v1607_v48 = vmul.f32 -1.442695, %v478_v50 }
 0x1ef   :  { %1666 = vpow2.f32 %v1607_v48 }
 0x1f0   :  { %1668 = vpow2.f32 %v1608_v49  ;;  %v3003_v49 = vld [vmem:[#allocation10_spill] sm:$0xff] }
 0x1fa   :  { %v1665_v46 = vpop.eup %1664 }
 0x1fb   :  { %v490_v0 = vadd.f32 1.0, %v1665_v46 }
 0x1fc   :  { %v1667_v55 = vpop.eup %1666 }
 0x1fd   :  { %1670 = vrcp.f32 %v490_v0  ;;  %v491_v62 = vadd.f32 1.0, %v1667_v55  ;;  %v1669_v51 = vpop.eup %1668  ;;  %v3005_v0 = vld [vmem:[#allocation12_spill] sm:$0xff]  ;;  %v3006_v55 = vld [vmem:[#allocation13_spill] sm:$0xff] }
 0x1fe   :  { %1672 = vtanh.f32 %v480_v1  ;;  %v492_v48 = vadd.f32 1.0, %v1669_v51  ;;  %v3004_v1 = vld [vmem:[#allocation11_spill] sm:$0xff] }
 0x1ff   :  { %1674 = vrcp.f32 %v491_v62  ;;  %v3007_v62 = vld [vmem:[#allocation14_spill] sm:$0xff]  ;;  %v3008_v51 = vld [vmem:[#allocation15_spill] sm:$0xff] }
 0x200   :  { %1676 = vrcp.f32 %v492_v48  ;;  %v3012_v48 = vld [vmem:[#allocation19_spill] sm:$0xff] }
 0x20a   :  { %v1671_v60 = vpop.eup %1670 }
 0x20b   :  { %v1673_v50 = vpop.eup %1672 }
 0x20c   :  { %v1675_v63 = vpop.eup %1674  ;;  %v501_v61 = vmul.f32 %v1673_v50, %v1671_v60  ;;  %v3009_v60 = vld [vmem:[#allocation16_spill] sm:$0xff]  ;;  %v3010_v50 = vld [vmem:[#allocation17_spill] sm:$0xff] }
 0x20d   :  { %v500_v45 = vmul.f32 %v1675_v63, %v2204_v54  ;;  %v1677_v57 = vpop.eup %1676  ;;  %v3000_v54 = vld [vmem:[#allocation7_spill] sm:$0xff]  ;;  %v3011_v63 = vld [vmem:[#allocation18_spill] sm:$0xff] }
 0x20f   :  { %v2283_v56 = vadd.f32 %v501_v61, %v500_v45  ;;  %v3013_v45 = vld [vmem:[#allocation20_spill] sm:$0xff]  ;;  %v3014_v61 = vld [vmem:[#allocation21_spill] sm:$0xff] }
 0x211   :  { %1678 = vtanh.f32 %v2283_v56 }
 0x21e   :  { %v1679_v46 = vpop.eup %1678 }
 0x21f   :  { %v504_v47 = vmul.f32 %v1679_v46, %v1677_v57  ;;  %v3015_v57 = vld [vmem:[#allocation22_spill] sm:$0xff]  ;;  %v3016_v46 = vld [vmem:[#allocation23_spill] sm:$0xff] }
 0x221   :  { %582 = vmatmul.mubr.f32.vlgmr.msra.gmra.mxu0 %v504_v47  ;;  %653 = vmatmul.mubr.f32.vlgmr.msra.gmra.mxu1 %v504_v47  ;;  %v3017_v47 = vld [vmem:[#allocation24_spill] sm:$0xff] }
 0x222   :  { %700 = vmatpush1.msra.mxu0 %v1909_v4  ;;  %771 = vmatpush1.msra.mxu1 %v1913_v5 }
 0x223   :  { %701 = vmatprep.subr.mxu0 %v1915_v6  ;;  %772 = vmatprep.subr.mxu1 %v1917_v7 }
 0x224   :  { %702 = vmatpush1.msra.mxu0 %v1921_v8  ;;  %773 = vmatpush1.msra.mxu1 %v1923_v9 }
 0x225   :  { %703 = vmatprep.subr.mxu0 %v1925_v10  ;;  %774 = vmatprep.subr.mxu1 %v1929_v11 }
 0x226   :  { %704 = vmatpush1.msra.mxu0 %v1931_v12  ;;  %775 = vmatpush1.msra.mxu1 %v1933_v13 }
 0x227   :  { %705 = vmatprep.subr.mxu0 %v1937_v14  ;;  %776 = vmatprep.subr.mxu1 %v1939_v15 }
 0x228   :  { %706 = vmatpush1.msra.mxu0 %v1943_v16  ;;  %777 = vmatpush1.msra.mxu1 %v1945_v17 }
 0x229   :  { %707 = vmatprep.subr.mxu0 %v1949_v18  ;;  %778 = vmatprep.subr.mxu1 %v1951_v19 }
 0x22a   :  { %708 = vmatpush1.msra.mxu0 %v1955_v20  ;;  %779 = vmatpush1.msra.mxu1 %v1957_v21 }
 0x22b   :  { %709 = vmatprep.subr.mxu0 %v1961_v22  ;;  %780 = vmatprep.subr.mxu1 %v1963_v23 }
 0x22c   :  { %710 = vmatpush1.msra.mxu0 %v1967_v24  ;;  %781 = vmatpush1.msra.mxu1 %v1969_v25 }
 0x22d   :  { %711 = vmatprep.subr.mxu0 %v1973_v26  ;;  %782 = vmatprep.subr.mxu1 %v1975_v27 }
 0x22e   :  { %712 = vmatpush1.msra.mxu0 %v1979_v28  ;;  %783 = vmatpush1.msra.mxu1 %v1981_v29 }
 0x22f   :  { %713 = vmatprep.subr.mxu0 %v1985_v30  ;;  %784 = vmatprep.subr.mxu1 %v1987_v31 }
 0x230   :  { %714 = vmatpush1.msra.mxu0 %v1991_v32  ;;  %785 = vmatpush1.msra.mxu1 %v1993_v33 }
 0x231   :  { %715 = vmatprep.subr.mxu0 %v1997_v34  ;;  %786 = vmatprep.subr.mxu1 %v1999_v35 }
 0x232   :  { %716 = vmatpush1.msra.mxu0 %v2003_v36  ;;  %787 = vmatpush1.msra.mxu1 %v2005_v37 }
 0x233   :  { %717 = vmatprep.subr.mxu0 %v2009_v38  ;;  %788 = vmatprep.subr.mxu1 %v2011_v39 }
 0x234   :  { %718 = vmatpush1.msra.mxu0 %v2015_v40  ;;  %789 = vmatpush1.msra.mxu1 %v2017_v41 }
 0x235   :  { %719 = vmatprep.subr.mxu0 %v2021_v42  ;;  %790 = vmatprep.subr.mxu1 %v2023_v43 }
 0x236   :  { %720 = vmatpush1.msra.mxu0 %v2027_v44  ;;  %791 = vmatpush1.msra.mxu1 %v3000_v54 }
 0x237   :  { %721 = vmatprep.subr.mxu0 %v3001_v52  ;;  %792 = vmatprep.subr.mxu1 %v3002_v2 }
 0x238   :  { %722 = vmatpush1.msra.mxu0 %v3003_v49  ;;  %793 = vmatpush1.msra.mxu1 %v3004_v1  ;;  %v3028_v1 = vld [vmem:[#allocation32_spill] sm:$0xff] }
 0x239   :  { %723 = vmatprep.subr.mxu0 %v3005_v0  ;;  %794 = vmatprep.subr.mxu1 %v3006_v55 }
 0x23a   :  { %724 = vmatpush1.msra.mxu0 %v3007_v62  ;;  %795 = vmatpush1.msra.mxu1 %v3008_v51  ;;  %v3018_v62 = vld [vmem:[#allocation25_spill] sm:$0xff]  ;;  %v3019_v51 = vld [vmem:[#allocation26_spill] sm:$0xff] }
 0x23b   :  { %725 = vmatprep.subr.mxu0 %v3009_v60  ;;  %796 = vmatprep.subr.mxu1 %v3010_v50  ;;  %v3020_v60 = vmov 0.0   ;;  %v3021_v50 = vld [vmem:[#allocation27_spill] sm:$0xff] }
 0x23c   :  { %726 = vmatpush1.msra.mxu0 %v3011_v63  ;;  %797 = vmatpush1.msra.mxu1 %v3012_v48  ;;  %v3022_v48 = vld [vmem:[#allocation5_spill] sm:$0xff] }
 0x23d   :  { %727 = vmatprep.subr.mxu0 %v3013_v45  ;;  %798 = vmatprep.subr.mxu1 %v3014_v61  ;;  %v3023_v45 = vld [vmem:[#allocation6_spill] sm:$0xff]  ;;  %v1870_v61 = vmov 3  }
 0x23e   :  { %728 = vmatpush1.msra.mxu0 %v3015_v57  ;;  %799 = vmatpush1.msra.mxu1 %v3016_v46  ;;  %v3024_v57 = vld [vmem:[#allocation28_spill] sm:$0xff]  ;;  %v507_v46 = vpop.permute.xlu1 %506 }
 0x23f   :  { %729 = vmatprep.subr.mxu0 %v3017_v47  ;;  %800 = vmatprep.subr.mxu1 %v3018_v62  ;;  %v3025_v47 = vld [vmem:[#allocation29_spill] sm:$0xff]  ;;  %v3026_v62 = vld [vmem:[#allocation30_spill] sm:$0xff] }
 0x240   :  { %730 = vmatpush1.msra.mxu0 %v3019_v51  ;;  %763 = vmatprep.mubr.f32.mxu0 %v3020_v60  ;;  %v509_v63 = vmul.f32 %v507_v46, %v3025_v47  ;;  %v510_v55 = vmul.f32 %v507_v46, %v3026_v62  ;;  %v3027_v51 = vld [vmem:[#allocation31_spill] sm:$0xff]  ;;  %v512_v47 = vmul.f32 %v507_v46, %v2197_v3 }
 0x241   :  { %801 = vmatpush1.msra.mxu1 %v3021_v50  ;;  %834 = vmatprep.mubr.f32.mxu1 %v3020_v60 }
 0x242   :  { %881 = vmatprep.subr.mxu0 %v3022_v48  ;;  %952 = vmatprep.subr.mxu1 %v3023_v45  ;;  %v513_v0 = vadd.f32 %v509_v63, %v3027_v51  ;;  %v514_v49 = vadd.f32 %v510_v55, %v3028_v1  ;;  %v511_v45 = vmul.f32 %v507_v46, %v2999_v53 }
 0x243   :  { %1642 = vset.pattern.permute.xlu1 %v1870_v61  ;;  %v516_v63 = vadd.f32 %v512_v47, %v2201_v59 }
 0x244   :  { %688 = vperm.xlu1 %1642, %v3024_v57   ;;  %v515_v57 = vadd.f32 %v511_v45, %v2195_v58 }
 0x2e1   :  { %v583_v50 = vpop.f32.mrf.mxu0  ;;  %v654_v54 = vpop.f32.mrf.mxu1 }
 0x2e2   :  { %v659_v2 = vadd.f32 %v583_v50, %v513_v0  ;;  %v661_v62 = vadd.f32 %v654_v54, %v515_v57 }
 0x2e3   :  { %v585_v60 = vpop.f32.mrf.mxu0  ;;  %v656_v51 = vpop.f32.mrf.mxu1 }
 0x2e4   :  { %v1609_v52 = vmul.f32 -1.442695, %v659_v2  ;;  %v660_v48 = vadd.f32 %v585_v60, %v514_v49  ;;  %v1611_v55 = vmul.f32 -1.442695, %v661_v62  ;;  %v662_v0 = vadd.f32 %v656_v51, %v516_v63 }
 0x2e6   :  { %1680 = vpow2.f32 %v1609_v52  ;;  %v1610_v61 = vmul.f32 -1.442695, %v660_v48 }
 0x2e8   :  { %1682 = vpow2.f32 %v1610_v61 }
 0x2e9   :  { %1684 = vpow2.f32 %v1611_v55 }
 0x2f3   :  { %v1681_v1 = vpop.eup %1680 }
 0x2f4   :  { %v672_v50 = vadd.f32 1.0, %v1681_v1 }
 0x2f5   :  { %v1683_v2 = vpop.eup %1682 }
 0x2f6   :  { %1686 = vrcp.f32 %v672_v50  ;;  %v673_v49 = vadd.f32 1.0, %v1683_v2  ;;  %v1685_v52 = vpop.eup %1684 }
 0x2f7   :  { %1688 = vtanh.f32 %v662_v0  ;;  %v674_v61 = vadd.f32 1.0, %v1685_v52 }
 0x2f8   :  { %1690 = vrcp.f32 %v673_v49 }
 0x2f9   :  { %1692 = vrcp.f32 %v674_v61 }
 0x303   :  { %v1687_v60 = vpop.eup %1686 }
 0x304   :  { %v1689_v48 = vpop.eup %1688 }
 0x305   :  { %v1691_v45 = vpop.eup %1690  ;;  %v683_v57 = vmul.f32 %v1689_v48, %v1687_v60 }
 0x306   :  { %v682_v54 = vmul.f32 %v1691_v45, %v2283_v56  ;;  %v1693_v1 = vpop.eup %1692 }
 0x308   :  { %v2362_v46 = vadd.f32 %v683_v57, %v682_v54 }
 0x30a   :  { %1694 = vtanh.f32 %v2362_v46 }
 0x317   :  { %v1695_v62 = vpop.eup %1694 }
 0x318   :  { %v686_v51 = vmul.f32 %v1695_v62, %v1693_v1 }
 0x31a   :  { %764 = vmatmul.mubr.f32.vlgmr.msra.gmra.mxu0 %v686_v51  ;;  %835 = vmatmul.mubr.f32.vlgmr.msra.gmra.mxu1 %v686_v51 }
 0x31b   :  { %882 = vmatpush1.msra.mxu0 %v1909_v4  ;;  %953 = vmatpush1.msra.mxu1 %v1913_v5  ;;  %v3029_v4 = vld [vmem:[#allocation7_spill] sm:$0xff]  ;;  %v3030_v5 = vld [vmem:[#allocation8_spill] sm:$0xff] }
 0x31c   :  { %883 = vmatprep.subr.mxu0 %v1915_v6  ;;  %954 = vmatprep.subr.mxu1 %v1917_v7  ;;  %v3031_v6 = vld [vmem:[#allocation9_spill] sm:$0xff]  ;;  %v3032_v7 = vld [vmem:[#allocation10_spill] sm:$0xff] }
 0x31d   :  { %884 = vmatpush1.msra.mxu0 %v1921_v8  ;;  %955 = vmatpush1.msra.mxu1 %v1923_v9  ;;  %v3033_v8 = vld [vmem:[#allocation11_spill] sm:$0xff]  ;;  %v3034_v9 = vld [vmem:[#allocation12_spill] sm:$0xff] }
 0x31e   :  { %885 = vmatprep.subr.mxu0 %v1925_v10  ;;  %956 = vmatprep.subr.mxu1 %v1929_v11  ;;  %v3035_v10 = vld [vmem:[#allocation13_spill] sm:$0xff]  ;;  %v3036_v11 = vld [vmem:[#allocation14_spill] sm:$0xff] }
 0x31f   :  { %886 = vmatpush1.msra.mxu0 %v1931_v12  ;;  %957 = vmatpush1.msra.mxu1 %v1933_v13  ;;  %v3037_v12 = vld [vmem:[#allocation15_spill] sm:$0xff]  ;;  %v3038_v13 = vld [vmem:[#allocation16_spill] sm:$0xff] }
 0x320   :  { %887 = vmatprep.subr.mxu0 %v1937_v14  ;;  %958 = vmatprep.subr.mxu1 %v1939_v15  ;;  %v3039_v14 = vld [vmem:[#allocation17_spill] sm:$0xff]  ;;  %v3040_v15 = vld [vmem:[#allocation18_spill] sm:$0xff] }
 0x321   :  { %888 = vmatpush1.msra.mxu0 %v1943_v16  ;;  %959 = vmatpush1.msra.mxu1 %v1945_v17  ;;  %v3041_v16 = vld [vmem:[#allocation19_spill] sm:$0xff]  ;;  %v3042_v17 = vld [vmem:[#allocation20_spill] sm:$0xff] }
 0x322   :  { %889 = vmatprep.subr.mxu0 %v1949_v18  ;;  %960 = vmatprep.subr.mxu1 %v1951_v19  ;;  %v3043_v18 = vld [vmem:[#allocation21_spill] sm:$0xff]  ;;  %v3044_v19 = vld [vmem:[#allocation22_spill] sm:$0xff] }
 0x323   :  { %890 = vmatpush1.msra.mxu0 %v1955_v20  ;;  %961 = vmatpush1.msra.mxu1 %v1957_v21  ;;  %v3045_v20 = vld [vmem:[#allocation23_spill] sm:$0xff]  ;;  %v3046_v21 = vld [vmem:[#allocation24_spill] sm:$0xff] }
 0x324   :  { %891 = vmatprep.subr.mxu0 %v1961_v22  ;;  %962 = vmatprep.subr.mxu1 %v1963_v23  ;;  %v3047_v22 = vld [vmem:[#allocation25_spill] sm:$0xff]  ;;  %v3048_v23 = vld [vmem:[#allocation26_spill] sm:$0xff] }
 0x325   :  { %892 = vmatpush1.msra.mxu0 %v1967_v24  ;;  %963 = vmatpush1.msra.mxu1 %v1969_v25  ;;  %v3049_v24 = vmov 0.0   ;;  %v3050_v25 = vld [vmem:[#allocation27_spill] sm:$0xff] }
 0x326   :  { %893 = vmatprep.subr.mxu0 %v1973_v26  ;;  %964 = vmatprep.subr.mxu1 %v1975_v27  ;;  %v2429_v26 = vld [vmem:[#allocation2 + $0x1e8] sm:$0xff]  ;;  %v2432_v27 = vld [vmem:[#allocation2 + $0x1f8] sm:$0xff] }
 0x327   :  { %894 = vmatpush1.msra.mxu0 %v1979_v28  ;;  %965 = vmatpush1.msra.mxu1 %v1981_v29  ;;  %3051 = vst [vmem:[#allocation33_spill] sm:$0xff] %v2429_v26  ;;  %3052 = vst [vmem:[#allocation5_spill] sm:$0xff] %v2432_v27  ;;  %v1871_v28 = vmov 4   ;;  %v3053_v29 = vld [vmem:[#allocation28_spill] sm:$0xff] }
 0x328   :  { %895 = vmatprep.subr.mxu0 %v1985_v30  ;;  %966 = vmatprep.subr.mxu1 %v1987_v31  ;;  %v689_v30 = vpop.permute.xlu1 %688  ;;  %v3054_v31 = vld [vmem:[#allocation29_spill] sm:$0xff] }
 0x329   :  { %896 = vmatpush1.msra.mxu0 %v1991_v32  ;;  %967 = vmatpush1.msra.mxu1 %v1993_v33  ;;  %v691_v32 = vmul.f32 %v689_v30, %v3054_v31  ;;  %v3055_v33 = vld [vmem:[#allocation30_spill] sm:$0xff]  ;;  %v694_v55 = vmul.f32 %v689_v30, %v2197_v3 }
 0x32a   :  { %897 = vmatprep.subr.mxu0 %v1997_v34  ;;  %968 = vmatprep.subr.mxu1 %v1999_v35  ;;  %v692_v34 = vmul.f32 %v689_v30, %v3055_v33  ;;  %v3056_v35 = vld [vmem:[#allocation31_spill] sm:$0xff] }
 0x32b   :  { %898 = vmatpush1.msra.mxu0 %v2003_v36  ;;  %969 = vmatpush1.msra.mxu1 %v2005_v37  ;;  %v695_v36 = vadd.f32 %v691_v32, %v3056_v35  ;;  %v3057_v37 = vld [vmem:[#allocation32_spill] sm:$0xff]  ;;  %v698_v50 = vadd.f32 %v694_v55, %v2201_v59  ;;  %v2544_v55 = vld [vmem:[#allocation2 + $0xe0] sm:$0xff] }
 0x32c   :  { %899 = vmatprep.subr.mxu0 %v2009_v38  ;;  %970 = vmatprep.subr.mxu1 %v2011_v39  ;;  %v696_v38 = vadd.f32 %v692_v34, %v3057_v37  ;;  %v2505_v32 = vld [vmem:[#allocation2 + $0x158] sm:$0xff]  ;;  %v2508_v34 = vld [vmem:[#allocation2 + $0x140] sm:$0xff] }
 0x32d   :  { %900 = vmatpush1.msra.mxu0 %v2015_v40  ;;  %971 = vmatpush1.msra.mxu1 %v2017_v41 }
 0x32e   :  { %901 = vmatprep.subr.mxu0 %v2021_v42  ;;  %972 = vmatprep.subr.mxu1 %v2023_v43 }
 0x32f   :  { %902 = vmatpush1.msra.mxu0 %v2027_v44  ;;  %973 = vmatpush1.msra.mxu1 %v3029_v4  ;;  %v693_v44 = vmul.f32 %v689_v30, %v2999_v53  ;;  %v2502_v30 = vld [vmem:[#allocation2 + $0x148] sm:$0xff] }
 0x330   :  { %903 = vmatprep.subr.mxu0 %v3030_v5  ;;  %974 = vmatprep.subr.mxu1 %v3031_v6 }
 0x331   :  { %904 = vmatpush1.msra.mxu0 %v3032_v7  ;;  %975 = vmatpush1.msra.mxu1 %v3033_v8  ;;  %v697_v47 = vadd.f32 %v693_v44, %v2195_v58  ;;  %v2532_v44 = vld [vmem:[#allocation2 + $0x100] sm:$0xff] }
 0x332   :  { %905 = vmatprep.subr.mxu0 %v3034_v9  ;;  %976 = vmatprep.subr.mxu1 %v3035_v10  ;;  %v2448_v10 = vld [vmem:[#allocation2 + $0x1e0] sm:$0xff] }
 0x333   :  { %906 = vmatpush1.msra.mxu0 %v3036_v11  ;;  %977 = vmatpush1.msra.mxu1 %v3037_v12  ;;  %v2451_v11 = vld [vmem:[#allocation2 + $0x1f0] sm:$0xff]  ;;  %v2457_v12 = vld [vmem:[#allocation2 + $0x1d8] sm:$0xff] }
 0x334   :  { %907 = vmatprep.subr.mxu0 %v3038_v13  ;;  %978 = vmatprep.subr.mxu1 %v3039_v14  ;;  %v2460_v13 = vld [vmem:[#allocation2 + $0x1c0] sm:$0xff]  ;;  %v2463_v14 = vld [vmem:[#allocation2 + $0x1d0] sm:$0xff] }
 0x335   :  { %908 = vmatpush1.msra.mxu0 %v3040_v15  ;;  %979 = vmatpush1.msra.mxu1 %v3041_v16  ;;  %v2466_v15 = vld [vmem:[#allocation2 + $0x1a8] sm:$0xff]  ;;  %v2469_v16 = vld [vmem:[#allocation2 + $0x1b8] sm:$0xff] }
 0x336   :  { %909 = vmatprep.subr.mxu0 %v3042_v17  ;;  %980 = vmatprep.subr.mxu1 %v3043_v18  ;;  %v2472_v17 = vld [vmem:[#allocation2 + $0x1a0] sm:$0xff]  ;;  %v2475_v18 = vld [vmem:[#allocation2 + $0x1b0] sm:$0xff] }
 0x337   :  { %910 = vmatpush1.msra.mxu0 %v3044_v19  ;;  %981 = vmatpush1.msra.mxu1 %v3045_v20  ;;  %v2478_v19 = vld [vmem:[#allocation2 + $0x188] sm:$0xff]  ;;  %v2481_v20 = vld [vmem:[#allocation2 + $0x198] sm:$0xff] }
 0x338   :  { %911 = vmatprep.subr.mxu0 %v3046_v21  ;;  %982 = vmatprep.subr.mxu1 %v3047_v22  ;;  %v2484_v21 = vld [vmem:[#allocation2 + $0x180] sm:$0xff]  ;;  %v2487_v22 = vld [vmem:[#allocation2 + $0x190] sm:$0xff] }
 0x339   :  { %912 = vmatpush1.msra.mxu0 %v3048_v23  ;;  %945 = vmatprep.mubr.f32.mxu0 %v3049_v24  ;;  %v2490_v23 = vld [vmem:[#allocation2 + $0x168] sm:$0xff] }
 0x33a   :  { %983 = vmatpush1.msra.mxu1 %v3050_v25  ;;  %1016 = vmatprep.mubr.f32.mxu1 %v3049_v24  ;;  %v2493_v25 = vld [vmem:[#allocation2 + $0x178] sm:$0xff] }
 0x33b   :  { %1063 = vmatprep.subr.mxu0 %v2429_v26  ;;  %1134 = vmatprep.subr.mxu1 %v2432_v27 }
 0x33c   :  { %1643 = vset.pattern.permute.xlu1 %v1871_v28  ;;  %v2496_v28 = vld [vmem:[#allocation2 + $0x160] sm:$0xff] }
 0x33d   :  { %870 = vperm.xlu1 %1643, %v3053_v29   ;;  %v2499_v29 = vld [vmem:[#allocation2 + $0x170] sm:$0xff] }
 0x3da   :  { %v765_v39 = vpop.f32.mrf.mxu0  ;;  %v836_v63 = vpop.f32.mrf.mxu1 }
 0x3db   :  { %v841_v40 = vadd.f32 %v765_v39, %v695_v36  ;;  %v843_v0 = vadd.f32 %v836_v63, %v697_v47  ;;  %v2511_v36 = vld [vmem:[#allocation2 + $0x150] sm:$0xff]  ;;  %v2517_v39 = vld [vmem:[#allocation2 + $0x138] sm:$0xff]  ;;  %v2538_v47 = vld [vmem:[#allocation2 + $0xe8] sm:$0xff] }
 0x3dc   :  { %v767_v41 = vpop.f32.mrf.mxu0  ;;  %v838_v2 = vpop.f32.mrf.mxu1  ;;  %v2541_v63 = vld [vmem:[#allocation2 + $0xf8] sm:$0xff] }
 0x3dd   :  { %v1612_v42 = vmul.f32 -1.442695, %v841_v40  ;;  %v842_v43 = vadd.f32 %v767_v41, %v696_v38  ;;  %v1614_v49 = vmul.f32 -1.442695, %v843_v0  ;;  %v844_v60 = vadd.f32 %v838_v2, %v698_v50  ;;  %v2514_v38 = vld [vmem:[#allocation2 + $0x128] sm:$0xff]  ;;  %v2520_v40 = vld [vmem:[#allocation2 + $0x120] sm:$0xff] }
 0x3de   :  { %v2523_v41 = vld [vmem:[#allocation2 + $0x130] sm:$0xff]  ;;  %v2550_v50 = vld [vmem:[#allocation2 + $0xc8] sm:$0xff]  ;;  %v2553_v2 = vld [vmem:[#allocation2 + $0xd8] sm:$0xff] }
 0x3df   :  { %1696 = vpow2.f32 %v1612_v42  ;;  %v1613_v56 = vmul.f32 -1.442695, %v842_v43  ;;  %v2526_v42 = vld [vmem:[#allocation2 + $0x108] sm:$0xff]  ;;  %v2529_v43 = vld [vmem:[#allocation2 + $0x118] sm:$0xff]  ;;  %v2547_v0 = vld [vmem:[#allocation2 + $0xf0] sm:$0xff] }
 0x3e1   :  { %1698 = vpow2.f32 %v1613_v56  ;;  %v2535_v56 = vld [vmem:[#allocation2 + $0x110] sm:$0xff] }
 0x3e2   :  { %1700 = vpow2.f32 %v1614_v49  ;;  %v2556_v49 = vld [vmem:[#allocation2 + $0xc0] sm:$0xff] }
 0x3ec   :  { %v1697_v52 = vpop.eup %1696 }
 0x3ed   :  { %v854_v48 = vadd.f32 1.0, %v1697_v52  ;;  %v2559_v52 = vld [vmem:[#allocation2 + $0xd0] sm:$0xff] }
 0x3ee   :  { %v1699_v45 = vpop.eup %1698 }
 0x3ef   :  { %1702 = vrcp.f32 %v854_v48  ;;  %v855_v61 = vadd.f32 1.0, %v1699_v45  ;;  %v1701_v54 = vpop.eup %1700  ;;  %v2565_v48 = vld [vmem:[#allocation2 + $0xb8] sm:$0xff]  ;;  %v2568_v45 = vld [vmem:[#allocation2 + $0xa0] sm:$0xff] }
 0x3f0   :  { %1704 = vtanh.f32 %v844_v60  ;;  %v856_v51 = vadd.f32 1.0, %v1701_v54  ;;  %v2562_v60 = vld [vmem:[#allocation2 + $0xa8] sm:$0xff] }
 0x3f1   :  { %1706 = vrcp.f32 %v855_v61  ;;  %v2571_v61 = vld [vmem:[#allocation2 + $0xb0] sm:$0xff]  ;;  %v2574_v54 = vld [vmem:[#allocation2 + $0x88] sm:$0xff] }
 0x3f2   :  { %1708 = vrcp.f32 %v856_v51  ;;  %3058 = vst [vmem:[#allocation6_spill] sm:$0xff] %v2571_v61  ;;  %3059 = vst [vmem:[#allocation7_spill] sm:$0xff] %v2574_v54  ;;  %v2586_v51 = vld [vmem:[#allocation2 + $0x68] sm:$0xff] }
 0x3f3   :  { %3063 = vst [vmem:[#allocation11_spill] sm:$0xff] %v2586_v51 }
 0x3fc   :  { %v1703_v57 = vpop.eup %1702 }
 0x3fd   :  { %v1705_v1 = vpop.eup %1704 }
 0x3fe   :  { %v1707_v62 = vpop.eup %1706  ;;  %v865_v5 = vmul.f32 %v1705_v1, %v1703_v57  ;;  %v2577_v57 = vld [vmem:[#allocation2 + $0x98] sm:$0xff]  ;;  %v2580_v1 = vld [vmem:[#allocation2 + $0x80] sm:$0xff] }
 0x3ff   :  { %v864_v4 = vmul.f32 %v1707_v62, %v2362_v46  ;;  %v1709_v7 = vpop.eup %1708  ;;  %v2454_v46 = vld [vmem:[#allocation2 + $0x1c8] sm:$0xff]  ;;  %3060 = vst [vmem:[#allocation8_spill] sm:$0xff] %v2577_v57  ;;  %3061 = vst [vmem:[#allocation9_spill] sm:$0xff] %v2580_v1  ;;  %v2583_v62 = vld [vmem:[#allocation2 + $0x90] sm:$0xff] }
 0x400   :  { %3062 = vst [vmem:[#allocation10_spill] sm:$0xff] %v2583_v62 }
 0x401   :  { %v2445_v6 = vadd.f32 %v865_v5, %v864_v4  ;;  %v2589_v4 = vld [vmem:[#allocation2 + $0x78] sm:$0xff]  ;;  %v2592_v5 = vld [vmem:[#allocation2 + $0x60] sm:$0xff] }
 0x402   :  { %3064 = vst [vmem:[#allocation12_spill] sm:$0xff] %v2589_v4  ;;  %3065 = vst [vmem:[#allocation13_spill] sm:$0xff] %v2592_v5 }
 0x403   :  { %1710 = vtanh.f32 %v2445_v6 }
 0x410   :  { %v1711_v8 = vpop.eup %1710 }
 0x411   :  { %v868_v9 = vmul.f32 %v1711_v8, %v1709_v7  ;;  %v2595_v7 = vld [vmem:[#allocation2 + $0x70] sm:$0xff]  ;;  %v2598_v8 = vld [vmem:[#allocation2 + $0x48] sm:$0xff] }
 0x412   :  { %3066 = vst [vmem:[#allocation14_spill] sm:$0xff] %v2595_v7  ;;  %3067 = vst [vmem:[#allocation15_spill] sm:$0xff] %v2598_v8 }
 0x413   :  { %946 = vmatmul.mubr.f32.vlgmr.msra.gmra.mxu0 %v868_v9  ;;  %1017 = vmatmul.mubr.f32.vlgmr.msra.gmra.mxu1 %v868_v9  ;;  %v2601_v9 = vld [vmem:[#allocation2 + $0x58] sm:$0xff] }
 0x414   :  { %1064 = vmatpush1.msra.mxu0 %v2448_v10  ;;  %1135 = vmatpush1.msra.mxu1 %v2451_v11  ;;  %3068 = vst [vmem:[#allocation16_spill] sm:$0xff] %v2601_v9 }
 0x415   :  { %1065 = vmatprep.subr.mxu0 %v2454_v46  ;;  %1136 = vmatprep.subr.mxu1 %v2457_v12 }
 0x416   :  { %1066 = vmatpush1.msra.mxu0 %v2460_v13  ;;  %1137 = vmatpush1.msra.mxu1 %v2463_v14 }
 0x417   :  { %1067 = vmatprep.subr.mxu0 %v2466_v15  ;;  %1138 = vmatprep.subr.mxu1 %v2469_v16 }
 0x418   :  { %1068 = vmatpush1.msra.mxu0 %v2472_v17  ;;  %1139 = vmatpush1.msra.mxu1 %v2475_v18 }
 0x419   :  { %1069 = vmatprep.subr.mxu0 %v2478_v19  ;;  %1140 = vmatprep.subr.mxu1 %v2481_v20 }
 0x41a   :  { %1070 = vmatpush1.msra.mxu0 %v2484_v21  ;;  %1141 = vmatpush1.msra.mxu1 %v2487_v22 }
 0x41b   :  { %1071 = vmatprep.subr.mxu0 %v2490_v23  ;;  %1142 = vmatprep.subr.mxu1 %v2493_v25 }
 0x41c   :  { %1072 = vmatpush1.msra.mxu0 %v2496_v28  ;;  %1143 = vmatpush1.msra.mxu1 %v2499_v29 }
 0x41d   :  { %1073 = vmatprep.subr.mxu0 %v2502_v30  ;;  %1144 = vmatprep.subr.mxu1 %v2505_v32 }
 0x41e   :  { %1074 = vmatpush1.msra.mxu0 %v2508_v34  ;;  %1145 = vmatpush1.msra.mxu1 %v2511_v36 }
 0x41f   :  { %1075 = vmatprep.subr.mxu0 %v2514_v38  ;;  %1146 = vmatprep.subr.mxu1 %v2517_v39 }
 0x420   :  { %1076 = vmatpush1.msra.mxu0 %v2520_v40  ;;  %1147 = vmatpush1.msra.mxu1 %v2523_v41 }
 0x421   :  { %1077 = vmatprep.subr.mxu0 %v2526_v42  ;;  %1148 = vmatprep.subr.mxu1 %v2529_v43 }
 0x422   :  { %1078 = vmatpush1.msra.mxu0 %v2532_v44  ;;  %1149 = vmatpush1.msra.mxu1 %v2535_v56 }
 0x423   :  { %1079 = vmatprep.subr.mxu0 %v2538_v47  ;;  %1150 = vmatprep.subr.mxu1 %v2541_v63 }
 0x424   :  { %1080 = vmatpush1.msra.mxu0 %v2544_v55  ;;  %1151 = vmatpush1.msra.mxu1 %v2547_v0 }
 0x425   :  { %1081 = vmatprep.subr.mxu0 %v2550_v50  ;;  %1152 = vmatprep.subr.mxu1 %v2553_v2 }
 0x426   :  { %1082 = vmatpush1.msra.mxu0 %v2556_v49  ;;  %1153 = vmatpush1.msra.mxu1 %v2559_v52 }
 0x427   :  { %1083 = vmatprep.subr.mxu0 %v2562_v60  ;;  %1154 = vmatprep.subr.mxu1 %v2565_v48 }
 0x428   :  { %1084 = vmatpush1.msra.mxu0 %v2568_v45  ;;  %1155 = vmatpush1.msra.mxu1 %v2571_v61 }
 0x429   :  { %1085 = vmatprep.subr.mxu0 %v2574_v54  ;;  %1156 = vmatprep.subr.mxu1 %v2577_v57 }
 0x42a   :  { %1086 = vmatpush1.msra.mxu0 %v2580_v1  ;;  %1157 = vmatpush1.msra.mxu1 %v2583_v62 }
 0x42b   :  { %1087 = vmatprep.subr.mxu0 %v2586_v51  ;;  %1158 = vmatprep.subr.mxu1 %v2589_v4  ;;  %v2604_v51 = vld [vmem:[#allocation2 + $0x40] sm:$0xff]  ;;  %v2607_v4 = vld [vmem:[#allocation2 + $0x50] sm:$0xff] }
 0x42c   :  { %1088 = vmatpush1.msra.mxu0 %v2592_v5  ;;  %1159 = vmatpush1.msra.mxu1 %v2595_v7  ;;  %3069 = vst [vmem:[#allocation17_spill] sm:$0xff] %v2604_v51  ;;  %3070 = vst [vmem:[#allocation18_spill] sm:$0xff] %v2607_v4  ;;  %v2610_v5 = vld [vmem:[#allocation2 + $0x28] sm:$0xff]  ;;  %v2613_v7 = vld [vmem:[#allocation2 + $0x38] sm:$0xff] }
 0x42d   :  { %1089 = vmatprep.subr.mxu0 %v2598_v8  ;;  %1160 = vmatprep.subr.mxu1 %v2601_v9  ;;  %3071 = vst [vmem:[#allocation19_spill] sm:$0xff] %v2610_v5  ;;  %3072 = vst [vmem:[#allocation20_spill] sm:$0xff] %v2613_v7  ;;  %v2616_v8 = vld [vmem:[#allocation2 + $0x20] sm:$0xff]  ;;  %v2619_v9 = vld [vmem:[#allocation2 + $0x30] sm:$0xff] }
 0x42e   :  { %1090 = vmatpush1.msra.mxu0 %v2604_v51  ;;  %1161 = vmatpush1.msra.mxu1 %v2607_v4  ;;  %3073 = vst [vmem:[#allocation21_spill] sm:$0xff] %v2616_v8  ;;  %3074 = vst [vmem:[#allocation22_spill] sm:$0xff] %v2619_v9  ;;  %v2622_v51 = vld [vmem:[#allocation2 + $0x8] sm:$0xff]  ;;  %v2625_v4 = vld [vmem:[#allocation2 + $0x18] sm:$0xff] }
 0x42f   :  { %1091 = vmatprep.subr.mxu0 %v2610_v5  ;;  %1162 = vmatprep.subr.mxu1 %v2613_v7  ;;  %3075 = vst [vmem:[#allocation23_spill] sm:$0xff] %v2622_v51  ;;  %3076 = vst [vmem:[#allocation24_spill] sm:$0xff] %v2625_v4  ;;  %v2628_v5 = vld [vmem:[#allocation2] sm:$0xff]  ;;  %v2632_v7 = vld [vmem:[#allocation2 + $0x10] sm:$0xff] }
 0x430   :  { %1092 = vmatpush1.msra.mxu0 %v2616_v8  ;;  %1163 = vmatpush1.msra.mxu1 %v2619_v9  ;;  %3077 = vst [vmem:[#allocation25_spill] sm:$0xff] %v2628_v5  ;;  %3078 = vst [vmem:[#allocation26_spill] sm:$0xff] %v2632_v7 }
 0x431   :  { %1093 = vmatprep.subr.mxu0 %v2622_v51  ;;  %1164 = vmatprep.subr.mxu1 %v2625_v4  ;;  %v1872_v51 = vmov 5   ;;  %v2641_v4 = vld [vmem:[%s2820_s0] sm:$0xff] }
 0x432   :  { %1094 = vmatpush1.msra.mxu0 %v2628_v5  ;;  %1127 = vmatprep.mubr.f32.mxu0 %v3049_v24  ;;  %3079 = vst [vmem:[#allocation27_spill] sm:$0xff] %v2641_v4  ;;  %v871_v5 = vpop.permute.xlu1 %870 }
 0x433   :  { %1165 = vmatpush1.msra.mxu1 %v2632_v7  ;;  %1198 = vmatprep.mubr.f32.mxu1 %v3049_v24  ;;  %v873_v9 = vmul.f32 %v871_v5, %v3054_v31  ;;  %v874_v7 = vmul.f32 %v871_v5, %v3055_v33  ;;  %v875_v57 = vmul.f32 %v871_v5, %v2999_v53 }
 0x434   :  { %1245 = vmatprep.subr.mxu0 %v2429_v26  ;;  %1316 = vmatprep.subr.mxu1 %v2432_v27  ;;  %v876_v31 = vmul.f32 %v871_v5, %v2197_v3  ;;  %v3081_v5 = vld [vmem:[#allocation7_spill] sm:$0xff] }
 0x435   :  { %1644 = vset.pattern.permute.xlu0 %v1872_v51  ;;  %v877_v24 = vadd.f32 %v873_v9, %v3056_v35  ;;  %v878_v26 = vadd.f32 %v874_v7, %v3057_v37 }
 0x436   :  { %1052 = vperm.xlu0 %1644, %v2641_v4   ;;  %v879_v4 = vadd.f32 %v875_v57, %v2195_v58  ;;  %v880_v9 = vadd.f32 %v876_v31, %v2201_v59 }
 0x4d3   :  { %v947_v8 = vpop.f32.mrf.mxu0  ;;  %v1018_v61 = vpop.f32.mrf.mxu1 }
 0x4d4   :  { %v1023_v27 = vadd.f32 %v947_v8, %v877_v24  ;;  %v1025_v33 = vadd.f32 %v1018_v61, %v879_v4 }
 0x4d5   :  { %v949_v62 = vpop.f32.mrf.mxu0  ;;  %v1020_v35 = vpop.f32.mrf.mxu1 }
 0x4d6   :  { %v1615_v51 = vmul.f32 -1.442695, %v1023_v27  ;;  %v1024_v1 = vadd.f32 %v949_v62, %v878_v26  ;;  %v1617_v7 = vmul.f32 -1.442695, %v1025_v33  ;;  %v1026_v24 = vadd.f32 %v1020_v35, %v880_v9  ;;  %v3082_v9 = vld [vmem:[#allocation8_spill] sm:$0xff] }
 0x4d8   :  { %1712 = vpow2.f32 %v1615_v51  ;;  %v1616_v54 = vmul.f32 -1.442695, %v1024_v1 }
 0x4da   :  { %1714 = vpow2.f32 %v1616_v54 }
 0x4db   :  { %1716 = vpow2.f32 %v1617_v7  ;;  %v3083_v7 = vld [vmem:[#allocation9_spill] sm:$0xff] }
 0x4e5   :  { %v1713_v37 = vpop.eup %1712 }
 0x4e6   :  { %v1036_v8 = vadd.f32 1.0, %v1713_v37 }
 0x4e7   :  { %v1715_v27 = vpop.eup %1714 }
 0x4e8   :  { %1718 = vrcp.f32 %v1036_v8  ;;  %v1037_v26 = vadd.f32 1.0, %v1715_v27  ;;  %v1717_v54 = vpop.eup %1716  ;;  %v3085_v8 = vld [vmem:[#allocation11_spill] sm:$0xff]  ;;  %v3086_v27 = vld [vmem:[#allocation12_spill] sm:$0xff] }
 0x4e9   :  { %1720 = vtanh.f32 %v1026_v24  ;;  %v1038_v51 = vadd.f32 1.0, %v1717_v54  ;;  %v3084_v24 = vld [vmem:[#allocation10_spill] sm:$0xff] }
 0x4ea   :  { %1722 = vrcp.f32 %v1037_v26  ;;  %v3087_v26 = vld [vmem:[#allocation13_spill] sm:$0xff]  ;;  %v3088_v54 = vld [vmem:[#allocation14_spill] sm:$0xff] }
 0x4eb   :  { %1724 = vrcp.f32 %v1038_v51  ;;  %v3092_v51 = vld [vmem:[#allocation18_spill] sm:$0xff] }
 0x4f5   :  { %v1719_v1 = vpop.eup %1718 }
 0x4f6   :  { %v1721_v57 = vpop.eup %1720 }
 0x4f7   :  { %v1723_v62 = vpop.eup %1722  ;;  %v1047_v4 = vmul.f32 %v1721_v57, %v1719_v1  ;;  %v3089_v1 = vld [vmem:[#allocation15_spill] sm:$0xff]  ;;  %v3090_v57 = vld [vmem:[#allocation16_spill] sm:$0xff] }
 0x4f8   :  { %v1046_v61 = vmul.f32 %v1723_v62, %v2445_v6  ;;  %v1725_v33 = vpop.eup %1724  ;;  %v3080_v6 = vld [vmem:[#allocation6_spill] sm:$0xff]  ;;  %v3091_v62 = vld [vmem:[#allocation17_spill] sm:$0xff] }
 0x4fa   :  { %v2653_v31 = vadd.f32 %v1047_v4, %v1046_v61  ;;  %v3093_v61 = vld [vmem:[#allocation19_spill] sm:$0xff]  ;;  %v3094_v4 = vld [vmem:[#allocation20_spill] sm:$0xff] }
 0x4fc   :  { %1726 = vtanh.f32 %v2653_v31 }
 0x509   :  { %v1727_v35 = vpop.eup %1726 }
 0x50a   :  { %v1050_v37 = vmul.f32 %v1727_v35, %v1725_v33  ;;  %v3095_v33 = vld [vmem:[#allocation21_spill] sm:$0xff]  ;;  %v3096_v35 = vld [vmem:[#allocation22_spill] sm:$0xff] }
 0x50c   :  { %1128 = vmatmul.mubr.f32.vlgmr.msra.gmra.mxu0 %v1050_v37  ;;  %1199 = vmatmul.mubr.f32.vlgmr.msra.gmra.mxu1 %v1050_v37  ;;  %v3097_v37 = vld [vmem:[#allocation23_spill] sm:$0xff] }
 0x50d   :  { %1246 = vmatpush1.msra.mxu0 %v2448_v10  ;;  %1317 = vmatpush1.msra.mxu1 %v2451_v11 }
 0x50e   :  { %1247 = vmatprep.subr.mxu0 %v2454_v46  ;;  %1318 = vmatprep.subr.mxu1 %v2457_v12 }
 0x50f   :  { %1248 = vmatpush1.msra.mxu0 %v2460_v13  ;;  %1319 = vmatpush1.msra.mxu1 %v2463_v14 }
 0x510   :  { %1249 = vmatprep.subr.mxu0 %v2466_v15  ;;  %1320 = vmatprep.subr.mxu1 %v2469_v16 }
 0x511   :  { %1250 = vmatpush1.msra.mxu0 %v2472_v17  ;;  %1321 = vmatpush1.msra.mxu1 %v2475_v18 }
 0x512   :  { %1251 = vmatprep.subr.mxu0 %v2478_v19  ;;  %1322 = vmatprep.subr.mxu1 %v2481_v20 }
 0x513   :  { %1252 = vmatpush1.msra.mxu0 %v2484_v21  ;;  %1323 = vmatpush1.msra.mxu1 %v2487_v22 }
 0x514   :  { %1253 = vmatprep.subr.mxu0 %v2490_v23  ;;  %1324 = vmatprep.subr.mxu1 %v2493_v25 }
 0x515   :  { %1254 = vmatpush1.msra.mxu0 %v2496_v28  ;;  %1325 = vmatpush1.msra.mxu1 %v2499_v29 }
 0x516   :  { %1255 = vmatprep.subr.mxu0 %v2502_v30  ;;  %1326 = vmatprep.subr.mxu1 %v2505_v32 }
 0x517   :  { %1256 = vmatpush1.msra.mxu0 %v2508_v34  ;;  %1327 = vmatpush1.msra.mxu1 %v2511_v36 }
 0x518   :  { %1257 = vmatprep.subr.mxu0 %v2514_v38  ;;  %1328 = vmatprep.subr.mxu1 %v2517_v39 }
 0x519   :  { %1258 = vmatpush1.msra.mxu0 %v2520_v40  ;;  %1329 = vmatpush1.msra.mxu1 %v2523_v41 }
 0x51a   :  { %1259 = vmatprep.subr.mxu0 %v2526_v42  ;;  %1330 = vmatprep.subr.mxu1 %v2529_v43 }
 0x51b   :  { %1260 = vmatpush1.msra.mxu0 %v2532_v44  ;;  %1331 = vmatpush1.msra.mxu1 %v2535_v56 }
 0x51c   :  { %1261 = vmatprep.subr.mxu0 %v2538_v47  ;;  %1332 = vmatprep.subr.mxu1 %v2541_v63 }
 0x51d   :  { %1262 = vmatpush1.msra.mxu0 %v2544_v55  ;;  %1333 = vmatpush1.msra.mxu1 %v2547_v0 }
 0x51e   :  { %1263 = vmatprep.subr.mxu0 %v2550_v50  ;;  %1334 = vmatprep.subr.mxu1 %v2553_v2 }
 0x51f   :  { %1264 = vmatpush1.msra.mxu0 %v2556_v49  ;;  %1335 = vmatpush1.msra.mxu1 %v2559_v52 }
 0x520   :  { %1265 = vmatprep.subr.mxu0 %v2562_v60  ;;  %1336 = vmatprep.subr.mxu1 %v2565_v48 }
 0x521   :  { %1266 = vmatpush1.msra.mxu0 %v2568_v45  ;;  %1337 = vmatpush1.msra.mxu1 %v3080_v6 }
 0x522   :  { %1267 = vmatprep.subr.mxu0 %v3081_v5  ;;  %1338 = vmatprep.subr.mxu1 %v3082_v9 }
 0x523   :  { %1268 = vmatpush1.msra.mxu0 %v3083_v7  ;;  %1339 = vmatpush1.msra.mxu1 %v3084_v24  ;;  %v3108_v24 = vld [vmem:[#allocation32_spill] sm:$0xff] }
 0x524   :  { %1269 = vmatprep.subr.mxu0 %v3085_v8  ;;  %1340 = vmatprep.subr.mxu1 %v3086_v27 }
 0x525   :  { %1270 = vmatpush1.msra.mxu0 %v3087_v26  ;;  %1341 = vmatpush1.msra.mxu1 %v3088_v54  ;;  %v3098_v26 = vld [vmem:[#allocation24_spill] sm:$0xff]  ;;  %v3099_v54 = vld [vmem:[#allocation25_spill] sm:$0xff] }
 0x526   :  { %1271 = vmatprep.subr.mxu0 %v3089_v1  ;;  %1342 = vmatprep.subr.mxu1 %v3090_v57  ;;  %v3100_v1 = vmov 0.0   ;;  %v3101_v57 = vld [vmem:[#allocation26_spill] sm:$0xff] }
 0x527   :  { %1272 = vmatpush1.msra.mxu0 %v3091_v62  ;;  %1343 = vmatpush1.msra.mxu1 %v3092_v51  ;;  %v3102_v51 = vld [vmem:[#allocation33_spill] sm:$0xff] }
 0x528   :  { %1273 = vmatprep.subr.mxu0 %v3093_v61  ;;  %1344 = vmatprep.subr.mxu1 %v3094_v4  ;;  %v3103_v61 = vld [vmem:[#allocation5_spill] sm:$0xff]  ;;  %v1873_v4 = vmov 6  }
 0x529   :  { %1274 = vmatpush1.msra.mxu0 %v3095_v33  ;;  %1345 = vmatpush1.msra.mxu1 %v3096_v35  ;;  %v3104_v33 = vld [vmem:[#allocation27_spill] sm:$0xff]  ;;  %v1053_v35 = vpop.permute.xlu0 %1052 }
 0x52a   :  { %1275 = vmatprep.subr.mxu0 %v3097_v37  ;;  %1346 = vmatprep.subr.mxu1 %v3098_v26  ;;  %v3105_v37 = vld [vmem:[#allocation29_spill] sm:$0xff]  ;;  %v3106_v26 = vld [vmem:[#allocation30_spill] sm:$0xff] }
 0x52b   :  { %1276 = vmatpush1.msra.mxu0 %v3099_v54  ;;  %1309 = vmatprep.mubr.f32.mxu0 %v3100_v1  ;;  %v1055_v62 = vmul.f32 %v1053_v35, %v3105_v37  ;;  %v1056_v27 = vmul.f32 %v1053_v35, %v3106_v26  ;;  %v3107_v54 = vld [vmem:[#allocation31_spill] sm:$0xff]  ;;  %v1058_v37 = vmul.f32 %v1053_v35, %v2197_v3 }
 0x52c   :  { %1347 = vmatpush1.msra.mxu1 %v3101_v57  ;;  %1380 = vmatprep.mubr.f32.mxu1 %v3100_v1 }
 0x52d   :  { %1427 = vmatprep.subr.mxu0 %v3102_v51  ;;  %1498 = vmatprep.subr.mxu1 %v3103_v61  ;;  %v1059_v8 = vadd.f32 %v1055_v62, %v3107_v54  ;;  %v1060_v7 = vadd.f32 %v1056_v27, %v3108_v24  ;;  %v1057_v61 = vmul.f32 %v1053_v35, %v2999_v53 }
 0x52e   :  { %1645 = vset.pattern.permute.xlu1 %v1873_v4  ;;  %v1062_v62 = vadd.f32 %v1058_v37, %v2201_v59 }
 0x52f   :  { %1234 = vperm.xlu1 %1645, %v3104_v33   ;;  %v1061_v33 = vadd.f32 %v1057_v61, %v2195_v58 }
 0x5cc   :  { %v1129_v57 = vpop.f32.mrf.mxu0  ;;  %v1200_v6 = vpop.f32.mrf.mxu1 }
 0x5cd   :  { %v1205_v9 = vadd.f32 %v1129_v57, %v1059_v8  ;;  %v1207_v26 = vadd.f32 %v1200_v6, %v1061_v33 }
 0x5ce   :  { %v1131_v1 = vpop.f32.mrf.mxu0  ;;  %v1202_v54 = vpop.f32.mrf.mxu1 }
 0x5cf   :  { %v1618_v5 = vmul.f32 -1.442695, %v1205_v9  ;;  %v1206_v51 = vadd.f32 %v1131_v1, %v1060_v7  ;;  %v1620_v27 = vmul.f32 -1.442695, %v1207_v26  ;;  %v1208_v8 = vadd.f32 %v1202_v54, %v1062_v62 }
 0x5d1   :  { %1728 = vpow2.f32 %v1618_v5  ;;  %v1619_v4 = vmul.f32 -1.442695, %v1206_v51 }
 0x5d3   :  { %1730 = vpow2.f32 %v1619_v4 }
 0x5d4   :  { %1732 = vpow2.f32 %v1620_v27 }
 0x5de   :  { %v1729_v24 = vpop.eup %1728 }
 0x5df   :  { %v1218_v57 = vadd.f32 1.0, %v1729_v24 }
 0x5e0   :  { %v1731_v9 = vpop.eup %1730 }
 0x5e1   :  { %1734 = vrcp.f32 %v1218_v57  ;;  %v1219_v7 = vadd.f32 1.0, %v1731_v9  ;;  %v1733_v5 = vpop.eup %1732 }
 0x5e2   :  { %1736 = vtanh.f32 %v1208_v8  ;;  %v1220_v4 = vadd.f32 1.0, %v1733_v5 }
 0x5e3   :  { %1738 = vrcp.f32 %v1219_v7 }
 0x5e4   :  { %1740 = vrcp.f32 %v1220_v4 }
 0x5ee   :  { %v1735_v1 = vpop.eup %1734 }
 0x5ef   :  { %v1737_v51 = vpop.eup %1736 }
 0x5f0   :  { %v1739_v61 = vpop.eup %1738  ;;  %v1229_v33 = vmul.f32 %v1737_v51, %v1735_v1 }
 0x5f1   :  { %v1228_v6 = vmul.f32 %v1739_v61, %v2653_v31  ;;  %v1741_v24 = vpop.eup %1740 }
 0x5f3   :  { %v2732_v35 = vadd.f32 %v1229_v33, %v1228_v6 }
 0x5f5   :  { %1742 = vtanh.f32 %v2732_v35 }
 0x602   :  { %v1743_v26 = vpop.eup %1742 }
 0x603   :  { %v1232_v54 = vmul.f32 %v1743_v26, %v1741_v24 }
 0x605   :  { %1310 = vmatmul.mubr.f32.vlgmr.msra.gmra.mxu0 %v1232_v54  ;;  %1381 = vmatmul.mubr.f32.vlgmr.msra.gmra.mxu1 %v1232_v54 }
 0x606   :  { %1428 = vmatpush1.msra.mxu0 %v2448_v10  ;;  %1499 = vmatpush1.msra.mxu1 %v2451_v11  ;;  %v3109_v10 = vld [vmem:[#allocation6_spill] sm:$0xff]  ;;  %v3110_v11 = vld [vmem:[#allocation7_spill] sm:$0xff] }
 0x607   :  { %1429 = vmatprep.subr.mxu0 %v2454_v46  ;;  %1500 = vmatprep.subr.mxu1 %v2457_v12  ;;  %v3111_v46 = vld [vmem:[#allocation8_spill] sm:$0xff]  ;;  %v3112_v12 = vld [vmem:[#allocation9_spill] sm:$0xff] }
 0x608   :  { %1430 = vmatpush1.msra.mxu0 %v2460_v13  ;;  %1501 = vmatpush1.msra.mxu1 %v2463_v14  ;;  %v3113_v13 = vld [vmem:[#allocation10_spill] sm:$0xff]  ;;  %v3114_v14 = vld [vmem:[#allocation11_spill] sm:$0xff] }
 0x609   :  { %1431 = vmatprep.subr.mxu0 %v2466_v15  ;;  %1502 = vmatprep.subr.mxu1 %v2469_v16  ;;  %v3115_v15 = vld [vmem:[#allocation12_spill] sm:$0xff]  ;;  %v3116_v16 = vld [vmem:[#allocation13_spill] sm:$0xff] }
 0x60a   :  { %1432 = vmatpush1.msra.mxu0 %v2472_v17  ;;  %1503 = vmatpush1.msra.mxu1 %v2475_v18  ;;  %v3117_v17 = vld [vmem:[#allocation14_spill] sm:$0xff]  ;;  %v3118_v18 = vld [vmem:[#allocation15_spill] sm:$0xff] }
 0x60b   :  { %1433 = vmatprep.subr.mxu0 %v2478_v19  ;;  %1504 = vmatprep.subr.mxu1 %v2481_v20  ;;  %v3119_v19 = vld [vmem:[#allocation16_spill] sm:$0xff]  ;;  %v3120_v20 = vld [vmem:[#allocation17_spill] sm:$0xff] }
 0x60c   :  { %1434 = vmatpush1.msra.mxu0 %v2484_v21  ;;  %1505 = vmatpush1.msra.mxu1 %v2487_v22  ;;  %v3121_v21 = vld [vmem:[#allocation18_spill] sm:$0xff]  ;;  %v3122_v22 = vld [vmem:[#allocation19_spill] sm:$0xff] }
 0x60d   :  { %1435 = vmatprep.subr.mxu0 %v2490_v23  ;;  %1506 = vmatprep.subr.mxu1 %v2493_v25  ;;  %v3123_v23 = vld [vmem:[#allocation20_spill] sm:$0xff]  ;;  %v3124_v25 = vld [vmem:[#allocation21_spill] sm:$0xff] }
 0x60e   :  { %1436 = vmatpush1.msra.mxu0 %v2496_v28  ;;  %1507 = vmatpush1.msra.mxu1 %v2499_v29  ;;  %v3125_v28 = vld [vmem:[#allocation22_spill] sm:$0xff]  ;;  %v3126_v29 = vld [vmem:[#allocation23_spill] sm:$0xff] }
 0x60f   :  { %1437 = vmatprep.subr.mxu0 %v2502_v30  ;;  %1508 = vmatprep.subr.mxu1 %v2505_v32  ;;  %v3127_v30 = vld [vmem:[#allocation24_spill] sm:$0xff]  ;;  %v3128_v32 = vld [vmem:[#allocation25_spill] sm:$0xff] }
 0x610   :  { %1438 = vmatpush1.msra.mxu0 %v2508_v34  ;;  %1509 = vmatpush1.msra.mxu1 %v2511_v36  ;;  %v3129_v34 = vmov 0.0   ;;  %v3130_v36 = vld [vmem:[#allocation26_spill] sm:$0xff] }
 0x611   :  { %1439 = vmatprep.subr.mxu0 %v2514_v38  ;;  %1510 = vmatprep.subr.mxu1 %v2517_v39  ;;  %v1874_v38 = vmov 7   ;;  %v3131_v39 = vld [vmem:[#allocation27_spill] sm:$0xff] }
 0x612   :  { %1440 = vmatpush1.msra.mxu0 %v2520_v40  ;;  %1511 = vmatpush1.msra.mxu1 %v2523_v41  ;;  %v1235_v40 = vpop.permute.xlu1 %1234  ;;  %v3132_v41 = vld [vmem:[#allocation29_spill] sm:$0xff] }
 0x613   :  { %1441 = vmatprep.subr.mxu0 %v2526_v42  ;;  %1512 = vmatprep.subr.mxu1 %v2529_v43  ;;  %v1237_v42 = vmul.f32 %v1235_v40, %v3132_v41  ;;  %v3133_v43 = vld [vmem:[#allocation30_spill] sm:$0xff]  ;;  %v1240_v37 = vmul.f32 %v1235_v40, %v2197_v3 }
 0x614   :  { %1442 = vmatpush1.msra.mxu0 %v2532_v44  ;;  %1513 = vmatpush1.msra.mxu1 %v2535_v56  ;;  %v1238_v44 = vmul.f32 %v1235_v40, %v3133_v43  ;;  %v3134_v56 = vld [vmem:[#allocation31_spill] sm:$0xff] }
 0x615   :  { %1443 = vmatprep.subr.mxu0 %v2538_v47  ;;  %1514 = vmatprep.subr.mxu1 %v2541_v63  ;;  %v1241_v47 = vadd.f32 %v1237_v42, %v3134_v56  ;;  %v3135_v63 = vld [vmem:[#allocation32_spill] sm:$0xff]  ;;  %v1244_v27 = vadd.f32 %v1240_v37, %v2201_v59 }
 0x616   :  { %1444 = vmatpush1.msra.mxu0 %v2544_v55  ;;  %1515 = vmatpush1.msra.mxu1 %v2547_v0  ;;  %v1242_v55 = vadd.f32 %v1238_v44, %v3135_v63 }
 0x617   :  { %1445 = vmatprep.subr.mxu0 %v2550_v50  ;;  %1516 = vmatprep.subr.mxu1 %v2553_v2 }
 0x618   :  { %1446 = vmatpush1.msra.mxu0 %v2556_v49  ;;  %1517 = vmatpush1.msra.mxu1 %v2559_v52 }
 0x619   :  { %1447 = vmatprep.subr.mxu0 %v2562_v60  ;;  %1518 = vmatprep.subr.mxu1 %v2565_v48  ;;  %v1239_v60 = vmul.f32 %v1235_v40, %v2999_v53 }
 0x61a   :  { %1448 = vmatpush1.msra.mxu0 %v2568_v45  ;;  %1519 = vmatpush1.msra.mxu1 %v3109_v10 }
 0x61b   :  { %1449 = vmatprep.subr.mxu0 %v3110_v11  ;;  %1520 = vmatprep.subr.mxu1 %v3111_v46  ;;  %v1243_v45 = vadd.f32 %v1239_v60, %v2195_v58 }
 0x61c   :  { %1450 = vmatpush1.msra.mxu0 %v3112_v12  ;;  %1521 = vmatpush1.msra.mxu1 %v3113_v13 }
 0x61d   :  { %1451 = vmatprep.subr.mxu0 %v3114_v14  ;;  %1522 = vmatprep.subr.mxu1 %v3115_v15 }
 0x61e   :  { %1452 = vmatpush1.msra.mxu0 %v3116_v16  ;;  %1523 = vmatpush1.msra.mxu1 %v3117_v17 }
 0x61f   :  { %1453 = vmatprep.subr.mxu0 %v3118_v18  ;;  %1524 = vmatprep.subr.mxu1 %v3119_v19 }
 0x620   :  { %1454 = vmatpush1.msra.mxu0 %v3120_v20  ;;  %1525 = vmatpush1.msra.mxu1 %v3121_v21 }
 0x621   :  { %1455 = vmatprep.subr.mxu0 %v3122_v22  ;;  %1526 = vmatprep.subr.mxu1 %v3123_v23 }
 0x622   :  { %1456 = vmatpush1.msra.mxu0 %v3124_v25  ;;  %1527 = vmatpush1.msra.mxu1 %v3125_v28 }
 0x623   :  { %1457 = vmatprep.subr.mxu0 %v3126_v29  ;;  %1528 = vmatprep.subr.mxu1 %v3127_v30 }
 0x624   :  { %1458 = vmatpush1.msra.mxu0 %v3128_v32  ;;  %1491 = vmatprep.mubr.f32.mxu0 %v3129_v34 }
 0x625   :  { %1529 = vmatpush1.msra.mxu1 %v3130_v36  ;;  %1562 = vmatprep.mubr.f32.mxu1 %v3129_v34 }
 0x626   :  { %1646 = vset.pattern.permute.xlu1 %v1874_v38  ;;  %1647 = vset.pattern.permute.xlu0 %v1874_v38 }
 0x627   :  { %1416 = vperm.xlu1 %1646, %v3131_v39  }
 0x6a2   :  { %v1417_v13 = vpop.permute.xlu1 %1416 }
 0x6a3   :  { %v1419_v14 = vmul.f32 %v1417_v13, %v3132_v41  ;;  %v1420_v15 = vmul.f32 %v1417_v13, %v3133_v43  ;;  %v1421_v22 = vmul.f32 %v1417_v13, %v2999_v53  ;;  %v1422_v29 = vmul.f32 %v1417_v13, %v2197_v3 }
 0x6a5   :  { %v1423_v16 = vadd.f32 %v1419_v14, %v3134_v56  ;;  %v1424_v17 = vadd.f32 %v1420_v15, %v3135_v63  ;;  %v1425_v25 = vadd.f32 %v1421_v22, %v2195_v58  ;;  %v1426_v32 = vadd.f32 %v1422_v29, %v2201_v59 }
 0x6c5   :  { %v1311_v0 = vpop.f32.mrf.mxu0  ;;  %v1382_v31 = vpop.f32.mrf.mxu1 }
 0x6c6   :  { %v1387_v50 = vadd.f32 %v1311_v0, %v1241_v47  ;;  %v1389_v62 = vadd.f32 %v1382_v31, %v1243_v45 }
 0x6c7   :  { %v1313_v2 = vpop.f32.mrf.mxu0  ;;  %v1384_v8 = vpop.f32.mrf.mxu1 }
 0x6c8   :  { %v1621_v49 = vmul.f32 -1.442695, %v1387_v50  ;;  %v1388_v52 = vadd.f32 %v1313_v2, %v1242_v55  ;;  %v1623_v57 = vmul.f32 -1.442695, %v1389_v62  ;;  %v1390_v7 = vadd.f32 %v1384_v8, %v1244_v27 }
 0x6ca   :  { %1744 = vpow2.f32 %v1621_v49  ;;  %v1622_v48 = vmul.f32 -1.442695, %v1388_v52 }
 0x6cc   :  { %1746 = vpow2.f32 %v1622_v48 }
 0x6cd   :  { %1748 = vpow2.f32 %v1623_v57 }
 0x6d7   :  { %v1745_v9 = vpop.eup %1744 }
 0x6d8   :  { %v1400_v5 = vadd.f32 1.0, %v1745_v9 }
 0x6d9   :  { %v1747_v1 = vpop.eup %1746 }
 0x6da   :  { %1750 = vrcp.f32 %v1400_v5  ;;  %v1401_v51 = vadd.f32 1.0, %v1747_v1  ;;  %v1749_v61 = vpop.eup %1748 }
 0x6db   :  { %1752 = vtanh.f32 %v1390_v7  ;;  %v1402_v24 = vadd.f32 1.0, %v1749_v61 }
 0x6dc   :  { %1754 = vrcp.f32 %v1401_v51 }
 0x6dd   :  { %1756 = vrcp.f32 %v1402_v24 }
 0x6e7   :  { %v1751_v4 = vpop.eup %1750 }
 0x6e8   :  { %v1753_v6 = vpop.eup %1752 }
 0x6e9   :  { %v1755_v33 = vpop.eup %1754  ;;  %v1411_v54 = vmul.f32 %v1753_v6, %v1751_v4 }
 0x6ea   :  { %v1410_v26 = vmul.f32 %v1755_v33, %v2732_v35  ;;  %v1757_v11 = vpop.eup %1756 }
 0x6ec   :  { %v1412_v10 = vadd.f32 %v1411_v54, %v1410_v26 }
 0x6ee   :  { %1758 = vtanh.f32 %v1412_v10 }
 0x6fb   :  { %v1759_v46 = vpop.eup %1758 }
 0x6fc   :  { %v1414_v12 = vmul.f32 %v1759_v46, %v1757_v11 }
 0x6fe   :  { %1492 = vmatmul.mubr.f32.vlgmr.msra.gmra.mxu0 %v1414_v12  ;;  %1563 = vmatmul.mubr.f32.vlgmr.msra.gmra.mxu1 %v1414_v12 }
 0x7be   :  { %v1493_v18 = vpop.f32.mrf.mxu0  ;;  %v1564_v28 = vpop.f32.mrf.mxu1 }
 0x7bf   :  { %v1569_v35 = vadd.f32 %v1493_v18, %v1423_v16  ;;  %v1571_v30 = vadd.f32 %v1564_v28, %v1425_v25 }
 0x7c0   :  { %v1495_v19 = vpop.f32.mrf.mxu0  ;;  %v1566_v34 = vpop.f32.mrf.mxu1 }
 0x7c1   :  { %v1624_v20 = vmul.f32 -1.442695, %v1569_v35  ;;  %v1570_v21 = vadd.f32 %v1495_v19, %v1424_v17  ;;  %v1626_v36 = vmul.f32 -1.442695, %v1571_v30  ;;  %v1572_v39 = vadd.f32 %v1566_v34, %v1426_v32 }
 0x7c3   :  { %1760 = vpow2.f32 %v1624_v20  ;;  %v1625_v23 = vmul.f32 -1.442695, %v1570_v21 }
 0x7c5   :  { %1762 = vpow2.f32 %v1625_v23 }
 0x7c6   :  { %1764 = vpow2.f32 %v1626_v36 }
 0x7d0   :  { %v1761_v38 = vpop.eup %1760 }
 0x7d1   :  { %v1582_v40 = vadd.f32 1.0, %v1761_v38 }
 0x7d2   :  { %v1763_v41 = vpop.eup %1762 }
 0x7d3   :  { %1766 = vrcp.f32 %v1582_v40  ;;  %v1583_v53 = vadd.f32 1.0, %v1763_v41  ;;  %v1765_v42 = vpop.eup %1764 }
 0x7d4   :  { %1768 = vtanh.f32 %v1572_v39  ;;  %v1584_v56 = vadd.f32 1.0, %v1765_v42 }
 0x7d5   :  { %1770 = vrcp.f32 %v1583_v53 }
 0x7d6   :  { %1772 = vrcp.f32 %v1584_v56 }
 0x7e0   :  { %v1767_v43 = vpop.eup %1766 }
 0x7e1   :  { %v1769_v58 = vpop.eup %1768 }
 0x7e2   :  { %v1771_v44 = vpop.eup %1770  ;;  %v1593_v47 = vmul.f32 %v1769_v58, %v1767_v43 }
 0x7e3   :  { %v1592_v3 = vmul.f32 %v1771_v44, %v1412_v10  ;;  %v1773_v59 = vpop.eup %1772 }
 0x7e5   :  { %v1594_v63 = vadd.f32 %v1593_v47, %v1592_v3 }
 0x7e7   :  { %1774 = vtanh.f32 %v1594_v63 }
 0x7f4   :  { %v1775_v55 = vpop.eup %1774 }
 0x7f5   :  { %v1596_v0 = vmul.f32 %v1775_v55, %v1773_v59 }
 0x7f7   :  { %1597 = vst [vmem:[%s2824_s4] sm:$0xff] %v1596_v0 }
 0x7f8   :  { %1602 = vsyncpa [#allocation3], 1 }

</bundles_post_ra>
